<compile_context>
chip_gen: v7x
topology: tpu7x:2x2x1
jax: 0.10.0
libtpu: 0.0.40
codegen_flags: <defaults>
</compile_context>

<pallas_src>
import math
import functools

import numpy as np
import jax
import jax.numpy as jnp
from jax import lax
from jax.experimental import pallas as pl
from jax.experimental.pallas import tpu as pltpu

EB = 128                                      # synthetic "BERT" hidden size
E = 128                                       # sent_hiddensize == dialog_embedding_size
SCALED_VALUE = float(int(math.sqrt(E * 1)))   # bi=1; int() truncation mirrors the torch code
LANE = 128


def _round_up(x, m):
    return (x + m - 1) // m * m


# ----------------------------------------------------------------------------
# Kernel 1: merged sentence encoder + hoisted bilinear projection
#   feats = (counts(ids)/W) @ (emb @ W_lin)  + b_lin        (== mean-pool + linear)
#   inter = feats @ W_bil                                    (used only for dialog rows)
# ----------------------------------------------------------------------------
def _encode_kernel(ids_ref, m_ref, b_ref, wb_ref, feat_ref, inter_ref):
    # ids_ref:[TN, W] i32   m_ref:[VOCABP, E] bf16   b_ref:[1, E] f32
    # wb_ref:[E, E] bf16    feat_ref/inter_ref:[TN, E] f32
    tn, w = ids_ref.shape
    vocab_p = m_ref.shape[0]

    ids = ids_ref[...]                                                    # [TN, W] i32
    vocab_iota = lax.broadcasted_iota(jnp.int32, (tn, vocab_p), 1)        # [TN, VOCABP]
    counts = jnp.zeros((tn, vocab_p), jnp.float32)
    for j in range(w):                                                    # W small & static
        counts = counts + (ids[:, j:j + 1] == vocab_iota).astype(jnp.float32)

    # counts/W is exactly representable in bf16 for W a power of two.
    pooled = (counts * (1.0 / w)).astype(jnp.bfloat16)                    # [TN, VOCABP]
    feats = jnp.dot(pooled, m_ref[...],
                    preferred_element_type=jnp.float32) + b_ref[...]      # [TN, E] f32
    feat_ref[...] = feats
    # Hoisted dlg @ W_bil (computed for every row; persona rows are discarded
    # by the wrapper — one extra MXU matmul per tile, keeps W_bil out of the
    # per-batch scoring kernel).
    inter_ref[...] = jnp.dot(feats.astype(jnp.bfloat16), wb_ref[...],
                             preferred_element_type=jnp.float32)


def _encode_all(ids_all, m_q_pad, b_row, wb_q, *, tile_n=128):
    """Encode all (dialog + persona) sentence rows in one pallas_call."""
    n_pad, w = ids_all.shape
    vocab_p = m_q_pad.shape[0]
    return pl.pallas_call(
        _encode_kernel,
        out_shape=(jax.ShapeDtypeStruct((n_pad, E), jnp.float32),
                   jax.ShapeDtypeStruct((n_pad, E), jnp.float32)),
        grid=(n_pad // tile_n,),
        in_specs=[
            pl.BlockSpec((tile_n, w), lambda i: (i, 0)),
            pl.BlockSpec((vocab_p, E), lambda i: (0, 0)),
            pl.BlockSpec((1, E), lambda i: (0, 0)),
            pl.BlockSpec((E, E), lambda i: (0, 0)),
        ],
        out_specs=(pl.BlockSpec((tile_n, E), lambda i: (i, 0)),
                   pl.BlockSpec((tile_n, E), lambda i: (i, 0))),
        compiler_params=pltpu.CompilerParams(dimension_semantics=("parallel",)),
    )(ids_all, m_q_pad, b_row, wb_q)


# ----------------------------------------------------------------------------
# Kernel 2: bilinear scoring.  One batch per grid step (grid=(B,), 'parallel'
# so both v7x TensorCores get work).  All lane dims padded to 128.
# ----------------------------------------------------------------------------
def _score_kernel(inv_scale, inter_ref, pers_ref, dmask_ref, pmask_ref, sel_ref,
                  gscore_ref, score_ref, sparse_ref):
    # inter_ref:[1,D,E]  pers_ref:[1,CPP,E]  dmask_ref:[1,D,1]  pmask_ref:[1,1,CPP]
    # sel_ref:[CPP,CL]   gscore_ref:[1,D,CPP]  score_ref/sparse_ref:[1,1,CL]
    inter = inter_ref[0]                                                  # [D, E]
    pers = pers_ref[0]                                                    # [CPP, E]

    # feature_map = (dlg @ W_bil) @ pers^T / scaled_value    (bf16 in, f32 acc)
    fm = lax.dot_general(inter.astype(jnp.bfloat16), pers.astype(jnp.bfloat16),
                         (((1,), (1,)), ((), ())),
                         preferred_element_type=jnp.float32) * inv_scale  # [D, CPP]

    wm = dmask_ref[0] * pmask_ref[0]                                      # [D, CPP]
    rep = fm * wm                                                         # masked scores
    gscore_ref[0] = rep                                                   # lane-dense (1,D,128)

    # score_train == 'sum': per-candidate segment sums via selector matmul (MXU).
    sel = sel_ref[...]                                                    # [CPP, CL] 0/1
    seg_sum = jnp.dot(rep, sel, preferred_element_type=jnp.float32)       # [D, CL]
    seg_abs = jnp.dot(jnp.abs(rep), sel, preferred_element_type=jnp.float32)
    seg_cnt = jnp.dot(wm, sel, preferred_element_type=jnp.float32)        # persona_count

    v_sum = jnp.sum(seg_sum, axis=0, keepdims=True)                       # [1, CL]
    a_sum = jnp.sum(seg_abs, axis=0, keepdims=True)
    v_cnt = jnp.sum((seg_cnt > 0.0).astype(jnp.float32), axis=0, keepdims=True)

    # Mirrors the torch semantics: a candidate with no valid persona gives
    # inf/nan (and padded candidate lanes give nan — sliced off in the wrapper).
    score_ref[0] = v_sum / v_cnt
    sparse_ref[0] = a_sum / v_cnt


# ----------------------------------------------------------------------------
def receiver_forward(xs, cands, params):
    """ReceiverEncoder.forward(xs, cands) with bilinear / scale / sum options."""
    B, D, W = xs.shape
    _, C, P, _ = cands.shape
    CP = C * P
    CPP = _round_up(CP, LANE)                 # persona axis, lane-dense
    CL = _round_up(C, LANE)                   # candidate axis, lane-dense
    vocab = params["emb"].shape[0]
    vocab_p = _round_up(vocab, LANE)

    # Weight folding / quantization (parameter-only precompute, done once).
    m_q = (params["emb"] @ params["w_lin"]).astype(jnp.bfloat16)          # [V, E]
    m_q_pad = jnp.pad(m_q, ((0, vocab_p - vocab), (0, 0)))
    wb_q = params["w_bil"].astype(jnp.bfloat16)
    b_row = params["b_lin"].reshape(1, E).astype(jnp.float32)

    # ---- merged sentence encoder over all rows -------------------------------
    # TODO(synk): the full pretrained BERT transformer stack has no clean Pallas
    # equivalent here; hidden states are approximated by the word embeddings.
    n_dlg, n_pers = B * D, B * C * P
    n = n_dlg + n_pers
    tile_n = 128                               # >=128 per review; use 256 at prod scale on v6e/v7x
    n_pad = _round_up(n, tile_n)
    ids_all = jnp.concatenate([xs.reshape(n_dlg, W), cands.reshape(n_pers, W)], axis=0)
    ids_all = jnp.pad(ids_all, ((0, n_pad - n), (0, 0)))

    feats, inter = _encode_all(ids_all, m_q_pad, b_row, wb_q, tile_n=tile_n)
    dlg_feats = feats[:n_dlg].reshape(B, D, E)                            # [B, D, E]
    pers_feats = feats[n_dlg:n].reshape(B, C, P, E)                       # [B, C, P, E]
    dlg_inter = inter[:n_dlg].reshape(B, D, E)                            # hoisted dlg @ W_bil

    # ---- masks & padded / flattened operands (cheap glue) --------------------
    dmask = (jnp.sum((xs != 0).astype(jnp.int32), axis=-1) != 0).astype(jnp.float32)    # [B, D]
    pmask = (jnp.sum((cands != 0).astype(jnp.int32), axis=-1) != 0).astype(jnp.float32) # [B, C, P]

    pers_pad = jnp.pad(pers_feats.reshape(B, CP, E), ((0, 0), (0, CPP - CP), (0, 0)))
    pmask_pad = jnp.pad(pmask.reshape(B, 1, CP), ((0, 0), (0, 0), (0, CPP - CP)))
    dmask_col = dmask[..., None]                                          # [B, D, 1]

    # Block one-hot selector: column c sums the P personas of candidate c.
    j = jnp.arange(CPP)
    sel = ((j[:, None] // P == jnp.arange(CL)[None, :]) & (j[:, None] < CP)).astype(jnp.float32)

    # ---- scoring kernel -------------------------------------------------------
    gscore_pad, score_pad, sparse_pad = pl.pallas_call(
        functools.partial(_score_kernel, 1.0 / SCALED_VALUE),
        out_shape=(
            jax.ShapeDtypeStruct((B, D, CPP), jnp.float32),   # grid_score (lane-dense)
            jax.ShapeDtypeStruct((B, 1, CL), jnp.float32),    # score (padded lanes)
            jax.ShapeDtypeStruct((B, 1, CL), jnp.float32),    # sparse_loss
        ),
        grid=(B,),
        in_specs=[
            pl.BlockSpec((1, D, E), lambda b: (b, 0, 0)),
            pl.BlockSpec((1, CPP, E), lambda b: (b, 0, 0)),
            pl.BlockSpec((1, D, 1), lambda b: (b, 0, 0)),
            pl.BlockSpec((1, 1, CPP), lambda b: (b, 0, 0)),
            pl.BlockSpec((CPP, CL), lambda b: (0, 0)),
        ],
        out_specs=(
            pl.BlockSpec((1, D, CPP), lambda b: (b, 0, 0)),
            pl.BlockSpec((1, 1, CL), lambda b: (b, 0, 0)),
            pl.BlockSpec((1, 1, CL), lambda b: (b, 0, 0)),
        ),
        compiler_params=pltpu.CompilerParams(dimension_semantics=("parallel",)),
    )(dlg_inter, pers_pad, dmask_col, pmask_pad, sel)

    # ---- reshape glue to match the PyTorch return layouts --------------------
    grid_score = gscore_pad[..., :CP].reshape(B, D, C, P).transpose(0, 2, 1, 3)  # [B, C, D, P]
    grid_mask = (dmask[:, None, :, None] * pmask[:, :, None, :]).astype(jnp.int32)
    score = score_pad[:, 0, :C]                                                  # [B, C]
    sparse_loss = sparse_pad[:, 0, :C]                                           # [B, C]
    # Kept for parity with the torch module's return value (callers that do not
    # need the expanded copy should use dlg_feats directly).
    dlg_expanded = jnp.broadcast_to(dlg_feats[:, None], (B, C, D, E)).reshape(B * C, D, E)
    return dlg_expanded, score, sparse_loss, grid_score, grid_mask


# ----------------------------------------------------------------------------
if __name__ == "__main__":
    B, D, C, P, W, VOCAB = 2, 8, 4, 4, 8, 32

    key = jax.random.PRNGKey(0)
    k1, k2, k3, k4, k5, k6 = jax.random.split(key, 6)
    xs = jax.random.randint(k1, (B, D, W), 1, VOCAB, dtype=jnp.int32)
    cands = jax.random.randint(k2, (B, C, P, W), 1, VOCAB, dtype=jnp.int32)

    params = {
        "emb":   jax.random.normal(k3, (VOCAB, EB), jnp.float32) * 0.5,
        "w_lin": jax.random.normal(k4, (EB, E), jnp.float32) * 0.1,
        "b_lin": jax.random.normal(k5, (E,), jnp.float32) * 0.1,
        "w_bil": jax.random.uniform(k6, (E, E), jnp.float32, -0.1, 0.1),
    }

    outs = jax.jit(receiver_forward)(xs, cands, params)
    outs = jax.block_until_ready(outs)
    dlg_exp, score, sparse, gscore, gmask = outs

    # --- pure-f32 reference of the original semantics ---
    def ref_encode(ids):
        lead = ids.shape[:-1]
        emb = params["emb"][ids.reshape(-1, ids.shape[-1])]
        pooled = emb.mean(axis=1)
        return (pooled @ params["w_lin"] + params["b_lin"]).reshape(*lead, E)

    dlg_r = ref_encode(xs)
    pers_r = ref_encode(cands)
    dmask_r = ((xs != 0).sum(-1) != 0).astype(jnp.float32)
    pmask_r = ((cands != 0).sum(-1) != 0).astype(jnp.float32)
    fm_r = jnp.einsum("bde,bcpe->bcdp", dlg_r @ params["w_bil"], pers_r) / SCALED_VALUE
    wm_r = dmask_r[:, None, :, None] * pmask_r[:, :, None, :]
    rep_r = fm_r * wm_r
    vcount_r = (wm_r.sum(axis=3) > 0).astype(jnp.float32).sum(axis=2)
    score_r = rep_r.sum(axis=(2, 3)) / vcount_r
    sparse_r = jnp.abs(rep_r).sum(axis=(2, 3)) / vcount_r
    dlg_exp_r = jnp.broadcast_to(dlg_r[:, None], (B, C, D, E)).reshape(B * C, D, E)

    # bf16 MXU inputs (f32 accumulation) -> slightly looser tolerances than pure f32.
    RTOL, ATOL = 3e-2, 3e-3
    np.testing.assert_allclose(np.asarray(dlg_exp), np.asarray(dlg_exp_r), rtol=RTOL, atol=ATOL)
    np.testing.assert_allclose(np.asarray(gscore), np.asarray(rep_r), rtol=RTOL, atol=ATOL)
    np.testing.assert_allclose(np.asarray(gmask), np.asarray(wm_r).astype(np.int32), rtol=0, atol=0)
    np.testing.assert_allclose(np.asarray(score), np.asarray(score_r), rtol=RTOL, atol=ATOL)
    np.testing.assert_allclose(np.asarray(sparse), np.asarray(sparse_r), rtol=RTOL, atol=ATOL)

    print("KERNEL_OK")
</pallas_src>

<mosaic_0001>
module attributes {stable_mosaic.version = 11 : i64} {
  func.func @_encode_kernel(%arg0: i32, %arg1: memref<128x8xi32, #tpu.memory_space<vmem>>, %arg2: memref<128x128xbf16, #tpu.memory_space<vmem>>, %arg3: memref<1x128xf32, #tpu.memory_space<vmem>>, %arg4: memref<128x128xbf16, #tpu.memory_space<vmem>>, %arg5: memref<128x128xf32, #tpu.memory_space<vmem>>, %arg6: memref<128x128xf32, #tpu.memory_space<vmem>>) attributes {dimension_semantics = [#tpu.dimension_semantics<parallel>], iteration_bounds = array<i64: 1>, scalar_prefetch = 0 : i64, scratch_operands = 0 : i64, tpu.core_type = #tpu.core_type<tc>, window_params = [{transform_indices = @transform_0, window_bounds = array<i64: 128, 8>}, {pipeline_mode = #tpu.pipeline_mode<synchronous>, transform_indices = @transform_1, window_bounds = array<i64: 128, 128>}, {pipeline_mode = #tpu.pipeline_mode<synchronous>, transform_indices = @transform_2, window_bounds = array<i64: 1, 128>}, {pipeline_mode = #tpu.pipeline_mode<synchronous>, transform_indices = @transform_3, window_bounds = array<i64: 128, 128>}, {transform_indices = @transform_4, window_bounds = array<i64: 128, 128>}, {transform_indices = @transform_5, window_bounds = array<i64: 128, 128>}]} {
    %c0 = arith.constant 0 : index
    %c0_0 = arith.constant 0 : index
    %0 = vector.load %arg1[%c0, %c0_0] : memref<128x8xi32, #tpu.memory_space<vmem>>, vector<128x8xi32>
    %1 = tpu.iota {dimensions = array<i32: 1>} : vector<128x128xi32>
    %cst = arith.constant 0.000000e+00 : f32
    %2 = vector.broadcast %cst : f32 to vector<128x128xf32>
    %3 = vector.extract_strided_slice %0 {offsets = [0, 0], sizes = [128, 1], strides = [1, 1]} : vector<128x8xi32> to vector<128x1xi32>
    %4 = vector.broadcast %3 : vector<128x1xi32> to vector<128x128xi32>
    %5 = arith.cmpi eq, %4, %1 : vector<128x128xi32>
    %6 = arith.extui %5 : vector<128x128xi1> to vector<128x128xi32>
    %7 = arith.sitofp %6 : vector<128x128xi32> to vector<128x128xf32>
    %8 = arith.addf %2, %7 : vector<128x128xf32>
    %9 = vector.extract_strided_slice %0 {offsets = [0, 1], sizes = [128, 1], strides = [1, 1]} : vector<128x8xi32> to vector<128x1xi32>
    %10 = vector.broadcast %9 : vector<128x1xi32> to vector<128x128xi32>
    %11 = arith.cmpi eq, %10, %1 : vector<128x128xi32>
    %12 = arith.extui %11 : vector<128x128xi1> to vector<128x128xi32>
    %13 = arith.sitofp %12 : vector<128x128xi32> to vector<128x128xf32>
    %14 = arith.addf %8, %13 : vector<128x128xf32>
    %15 = vector.extract_strided_slice %0 {offsets = [0, 2], sizes = [128, 1], strides = [1, 1]} : vector<128x8xi32> to vector<128x1xi32>
    %16 = vector.broadcast %15 : vector<128x1xi32> to vector<128x128xi32>
    %17 = arith.cmpi eq, %16, %1 : vector<128x128xi32>
    %18 = arith.extui %17 : vector<128x128xi1> to vector<128x128xi32>
    %19 = arith.sitofp %18 : vector<128x128xi32> to vector<128x128xf32>
    %20 = arith.addf %14, %19 : vector<128x128xf32>
    %21 = vector.extract_strided_slice %0 {offsets = [0, 3], sizes = [128, 1], strides = [1, 1]} : vector<128x8xi32> to vector<128x1xi32>
    %22 = vector.broadcast %21 : vector<128x1xi32> to vector<128x128xi32>
    %23 = arith.cmpi eq, %22, %1 : vector<128x128xi32>
    %24 = arith.extui %23 : vector<128x128xi1> to vector<128x128xi32>
    %25 = arith.sitofp %24 : vector<128x128xi32> to vector<128x128xf32>
    %26 = arith.addf %20, %25 : vector<128x128xf32>
    %27 = vector.extract_strided_slice %0 {offsets = [0, 4], sizes = [128, 1], strides = [1, 1]} : vector<128x8xi32> to vector<128x1xi32>
    %28 = vector.broadcast %27 : vector<128x1xi32> to vector<128x128xi32>
    %29 = arith.cmpi eq, %28, %1 : vector<128x128xi32>
    %30 = arith.extui %29 : vector<128x128xi1> to vector<128x128xi32>
    %31 = arith.sitofp %30 : vector<128x128xi32> to vector<128x128xf32>
    %32 = arith.addf %26, %31 : vector<128x128xf32>
    %33 = vector.extract_strided_slice %0 {offsets = [0, 5], sizes = [128, 1], strides = [1, 1]} : vector<128x8xi32> to vector<128x1xi32>
    %34 = vector.broadcast %33 : vector<128x1xi32> to vector<128x128xi32>
    %35 = arith.cmpi eq, %34, %1 : vector<128x128xi32>
    %36 = arith.extui %35 : vector<128x128xi1> to vector<128x128xi32>
    %37 = arith.sitofp %36 : vector<128x128xi32> to vector<128x128xf32>
    %38 = arith.addf %32, %37 : vector<128x128xf32>
    %39 = vector.extract_strided_slice %0 {offsets = [0, 6], sizes = [128, 1], strides = [1, 1]} : vector<128x8xi32> to vector<128x1xi32>
    %40 = vector.broadcast %39 : vector<128x1xi32> to vector<128x128xi32>
    %41 = arith.cmpi eq, %40, %1 : vector<128x128xi32>
    %42 = arith.extui %41 : vector<128x128xi1> to vector<128x128xi32>
    %43 = arith.sitofp %42 : vector<128x128xi32> to vector<128x128xf32>
    %44 = arith.addf %38, %43 : vector<128x128xf32>
    %45 = vector.extract_strided_slice %0 {offsets = [0, 7], sizes = [128, 1], strides = [1, 1]} : vector<128x8xi32> to vector<128x1xi32>
    %46 = vector.broadcast %45 : vector<128x1xi32> to vector<128x128xi32>
    %47 = arith.cmpi eq, %46, %1 : vector<128x128xi32>
    %48 = arith.extui %47 : vector<128x128xi1> to vector<128x128xi32>
    %49 = arith.sitofp %48 : vector<128x128xi32> to vector<128x128xf32>
    %50 = arith.addf %44, %49 : vector<128x128xf32>
    %cst_1 = arith.constant 1.250000e-01 : f32
    %51 = vector.broadcast %cst_1 : f32 to vector<128x128xf32>
    %52 = arith.mulf %50, %51 : vector<128x128xf32>
    %53 = arith.truncf %52 : vector<128x128xf32> to vector<128x128xbf16>
    %c0_2 = arith.constant 0 : index
    %c0_3 = arith.constant 0 : index
    %54 = vector.load %arg2[%c0_2, %c0_3] : memref<128x128xbf16, #tpu.memory_space<vmem>>, vector<128x128xbf16>
    %cst_4 = arith.constant dense<0.000000e+00> : vector<128x128xf32>
    %55 = tpu.matmul %53, %54, %cst_4 {dimension_numbers = #tpu.dot_dimension_numbers<[1], [0], [0], [1], [0, 0, 1, 1], [], []>} : vector<128x128xbf16>, vector<128x128xbf16>, vector<128x128xf32> -> vector<128x128xf32>
    %c0_5 = arith.constant 0 : index
    %c0_6 = arith.constant 0 : index
    %56 = vector.load %arg3[%c0_5, %c0_6] : memref<1x128xf32, #tpu.memory_space<vmem>>, vector<1x128xf32>
    %57 = vector.broadcast %56 : vector<1x128xf32> to vector<128x128xf32>
    %58 = arith.addf %55, %57 : vector<128x128xf32>
    %c0_7 = arith.constant 0 : index
    %c0_8 = arith.constant 0 : index
    %59 = vector.load %arg5[%c0_7, %c0_8] : memref<128x128xf32, #tpu.memory_space<vmem>>, vector<128x128xf32>
    tpu.vector_store %arg5[%c0_7, %c0_8], %58 {strides = array<i32>} : memref<128x128xf32, #tpu.memory_space<vmem>>, vector<128x128xf32>,
    %60 = arith.truncf %58 : vector<128x128xf32> to vector<128x128xbf16>
    %c0_9 = arith.constant 0 : index
    %c0_10 = arith.constant 0 : index
    %61 = vector.load %arg4[%c0_9, %c0_10] : memref<128x128xbf16, #tpu.memory_space<vmem>>, vector<128x128xbf16>
    %cst_11 = arith.constant dense<0.000000e+00> : vector<128x128xf32>
    %62 = tpu.matmul %60, %61, %cst_11 {dimension_numbers = #tpu.dot_dimension_numbers<[1], [0], [0], [1], [0, 0, 1, 1], [], []>} : vector<128x128xbf16>, vector<128x128xbf16>, vector<128x128xf32> -> vector<128x128xf32>
    %c0_12 = arith.constant 0 : index
    %c0_13 = arith.constant 0 : index
    %63 = vector.load %arg6[%c0_12, %c0_13] : memref<128x128xf32, #tpu.memory_space<vmem>>, vector<128x128xf32>
    tpu.vector_store %arg6[%c0_12, %c0_13], %62 {strides = array<i32>} : memref<128x128xf32, #tpu.memory_space<vmem>>, vector<128x128xf32>,
    return
  }
  func.func @transform_0(%arg0: i32) -> (i32, i32) {
    %c0_i32 = arith.constant 0 : i32
    %c0_i32_0 = arith.constant 0 : i32
    return %arg0, %c0_i32 : i32, i32
  }
  func.func @transform_1(%arg0: i32) -> (i32, i32) {
    %c0_i32 = arith.constant 0 : i32
    %c0_i32_0 = arith.constant 0 : i32
    %c0_i32_1 = arith.constant 0 : i32
    return %c0_i32, %c0_i32_0 : i32, i32
  }
  func.func @transform_2(%arg0: i32) -> (i32, i32) {
    %c0_i32 = arith.constant 0 : i32
    %c0_i32_0 = arith.constant 0 : i32
    %c0_i32_1 = arith.constant 0 : i32
    return %c0_i32, %c0_i32_0 : i32, i32
  }
  func.func @transform_3(%arg0: i32) -> (i32, i32) {
    %c0_i32 = arith.constant 0 : i32
    %c0_i32_0 = arith.constant 0 : i32
    %c0_i32_1 = arith.constant 0 : i32
    return %c0_i32, %c0_i32_0 : i32, i32
  }
  func.func @transform_4(%arg0: i32) -> (i32, i32) {
    %c0_i32 = arith.constant 0 : i32
    %c0_i32_0 = arith.constant 0 : i32
    return %arg0, %c0_i32 : i32, i32
  }
  func.func @transform_5(%arg0: i32) -> (i32, i32) {
    %c0_i32 = arith.constant 0 : i32
    %c0_i32_0 = arith.constant 0 : i32
    return %arg0, %c0_i32 : i32, i32
  }
}

module attributes {stable_mosaic.version = 11 : i64} {
  func.func @_score_kernel(%arg0: i32, %arg1: memref<1x8x128xf32, #tpu.memory_space<vmem>>, %arg2: memref<1x128x128xf32, #tpu.memory_space<vmem>>, %arg3: memref<1x8x1xf32, #tpu.memory_space<vmem>>, %arg4: memref<1x1x128xf32, #tpu.memory_space<vmem>>, %arg5: memref<128x128xf32, #tpu.memory_space<vmem>>, %arg6: memref<1x8x128xf32, #tpu.memory_space<vmem>>, %arg7: memref<1x1x128xf32, #tpu.memory_space<vmem>>, %arg8: memref<1x1x128xf32, #tpu.memory_space<vmem>>) attributes {dimension_semantics = [#tpu.dimension_semantics<parallel>], iteration_bounds = array<i64: 2>, scalar_prefetch = 0 : i64, scratch_operands = 0 : i64, tpu.core_type = #tpu.core_type<tc>, window_params = [{transform_indices = @transform_0, window_bounds = array<i64: 1, 8, 128>}, {transform_indices = @transform_1, window_bounds = array<i64: 1, 128, 128>}, {transform_indices = @transform_2, window_bounds = array<i64: 1, 8, 1>}, {transform_indices = @transform_3, window_bounds = array<i64: 1, 1, 128>}, {pipeline_mode = #tpu.pipeline_mode<synchronous>, transform_indices = @transform_4, window_bounds = array<i64: 128, 128>}, {transform_indices = @transform_5, window_bounds = array<i64: 1, 8, 128>}, {transform_indices = @transform_6, window_bounds = array<i64: 1, 1, 128>}, {transform_indices = @transform_7, window_bounds = array<i64: 1, 1, 128>}]} {
    %c0 = arith.constant 0 : index
    %c0_0 = arith.constant 0 : index
    %c0_1 = arith.constant 0 : index
    %0 = vector.load %arg1[%c0, %c0_0, %c0_1] : memref<1x8x128xf32, #tpu.memory_space<vmem>>, vector<1x8x128xf32>
    %1 = vector.shape_cast %0 : vector<1x8x128xf32> to vector<8x128xf32>
    %c0_2 = arith.constant 0 : index
    %c0_3 = arith.constant 0 : index
    %c0_4 = arith.constant 0 : index
    %2 = vector.load %arg2[%c0_2, %c0_3, %c0_4] : memref<1x128x128xf32, #tpu.memory_space<vmem>>, vector<1x128x128xf32>
    %3 = vector.shape_cast %2 : vector<1x128x128xf32> to vector<128x128xf32>
    %4 = arith.truncf %1 : vector<8x128xf32> to vector<8x128xbf16>
    %5 = arith.truncf %3 : vector<128x128xf32> to vector<128x128xbf16>
    %cst = arith.constant dense<0.000000e+00> : vector<8x128xf32>
    %6 = tpu.matmul %4, %5, %cst {dimension_numbers = #tpu.dot_dimension_numbers<[1], [1], [0], [0], [0, 0, 1, 0], [], []>} : vector<8x128xbf16>, vector<128x128xbf16>, vector<8x128xf32> -> vector<8x128xf32>
    %cst_5 = arith.constant 0.0909090936 : f32
    %7 = vector.broadcast %cst_5 : f32 to vector<8x128xf32>
    %8 = arith.mulf %6, %7 : vector<8x128xf32>
    %c0_6 = arith.constant 0 : index
    %c0_7 = arith.constant 0 : index
    %c0_8 = arith.constant 0 : index
    %9 = vector.load %arg3[%c0_6, %c0_7, %c0_8] : memref<1x8x1xf32, #tpu.memory_space<vmem>>, vector<1x8x1xf32>
    %10 = vector.shape_cast %9 : vector<1x8x1xf32> to vector<8x1xf32>
    %c0_9 = arith.constant 0 : index
    %c0_10 = arith.constant 0 : index
    %c0_11 = arith.constant 0 : index
    %11 = vector.load %arg4[%c0_9, %c0_10, %c0_11] : memref<1x1x128xf32, #tpu.memory_space<vmem>>, vector<1x1x128xf32>
    %12 = vector.shape_cast %11 : vector<1x1x128xf32> to vector<1x128xf32>
    %13 = vector.broadcast %10 : vector<8x1xf32> to vector<8x128xf32>
    %14 = vector.broadcast %12 : vector<1x128xf32> to vector<8x128xf32>
    %15 = arith.mulf %13, %14 : vector<8x128xf32>
    %16 = arith.mulf %8, %15 : vector<8x128xf32>
    %c0_12 = arith.constant 0 : index
    %c0_13 = arith.constant 0 : index
    %c0_14 = arith.constant 0 : index
    %17 = vector.load %arg6[%c0_12, %c0_13, %c0_14] : memref<1x8x128xf32, #tpu.memory_space<vmem>>, vector<1x8x128xf32>
    %18 = vector.shape_cast %17 : vector<1x8x128xf32> to vector<8x128xf32>
    %19 = vector.shape_cast %16 : vector<8x128xf32> to vector<1x8x128xf32>
    tpu.vector_store %arg6[%c0_12, %c0_13, %c0_14], %19 {strides = array<i32>} : memref<1x8x128xf32, #tpu.memory_space<vmem>>, vector<1x8x128xf32>,
    %c0_15 = arith.constant 0 : index
    %c0_16 = arith.constant 0 : index
    %20 = vector.load %arg5[%c0_15, %c0_16] : memref<128x128xf32, #tpu.memory_space<vmem>>, vector<128x128xf32>
    %cst_17 = arith.constant dense<0.000000e+00> : vector<8x128xf32>
    %21 = tpu.matmul %16, %20, %cst_17 {dimension_numbers = #tpu.dot_dimension_numbers<[1], [0], [0], [1], [0, 0, 1, 1], [], []>} : vector<8x128xf32>, vector<128x128xf32>, vector<8x128xf32> -> vector<8x128xf32>
    %22 = math.absf %16 : vector<8x128xf32>
    %cst_18 = arith.constant dense<0.000000e+00> : vector<8x128xf32>
    %23 = tpu.matmul %22, %20, %cst_18 {dimension_numbers = #tpu.dot_dimension_numbers<[1], [0], [0], [1], [0, 0, 1, 1], [], []>} : vector<8x128xf32>, vector<128x128xf32>, vector<8x128xf32> -> vector<8x128xf32>
    %cst_19 = arith.constant dense<0.000000e+00> : vector<8x128xf32>
    %24 = tpu.matmul %15, %20, %cst_19 {dimension_numbers = #tpu.dot_dimension_numbers<[1], [0], [0], [1], [0, 0, 1, 1], [], []>} : vector<8x128xf32>, vector<128x128xf32>, vector<8x128xf32> -> vector<8x128xf32>
    %cst_20 = arith.constant dense<0.000000e+00> : vector<128xf32>
    %25 = vector.multi_reduction <add>, %21, %cst_20 [0] : vector<8x128xf32> to vector<128xf32>
    %26 = vector.shape_cast %25 : vector<128xf32> to vector<1x128xf32>
    %cst_21 = arith.constant dense<0.000000e+00> : vector<128xf32>
    %27 = vector.multi_reduction <add>, %23, %cst_21 [0] : vector<8x128xf32> to vector<128xf32>
    %28 = vector.shape_cast %27 : vector<128xf32> to vector<1x128xf32>
    %cst_22 = arith.constant 0.000000e+00 : f32
    %29 = vector.broadcast %cst_22 : f32 to vector<8x128xf32>
    %30 = arith.cmpf ogt, %24, %29 : vector<8x128xf32>
    %31 = arith.extui %30 : vector<8x128xi1> to vector<8x128xi32>
    %32 = arith.sitofp %31 : vector<8x128xi32> to vector<8x128xf32>
    %cst_23 = arith.constant dense<0.000000e+00> : vector<128xf32>
    %33 = vector.multi_reduction <add>, %32, %cst_23 [0] : vector<8x128xf32> to vector<128xf32>
    %34 = vector.shape_cast %33 : vector<128xf32> to vector<1x128xf32>
    %35 = arith.divf %26, %34 : vector<1x128xf32>
    %c0_24 = arith.constant 0 : index
    %c0_25 = arith.constant 0 : index
    %c0_26 = arith.constant 0 : index
    %36 = vector.load %arg7[%c0_24, %c0_25, %c0_26] : memref<1x1x128xf32, #tpu.memory_space<vmem>>, vector<1x1x128xf32>
    %37 = vector.shape_cast %36 : vector<1x1x128xf32> to vector<1x128xf32>
    %38 = vector.shape_cast %35 : vector<1x128xf32> to vector<1x1x128xf32>
    tpu.vector_store %arg7[%c0_24, %c0_25, %c0_26], %38 {strides = array<i32>} : memref<1x1x128xf32, #tpu.memory_space<vmem>>, vector<1x1x128xf32>,
    %39 = arith.divf %28, %34 : vector<1x128xf32>
    %c0_27 = arith.constant 0 : index
    %c0_28 = arith.constant 0 : index
    %c0_29 = arith.constant 0 : index
    %40 = vector.load %arg8[%c0_27, %c0_28, %c0_29] : memref<1x1x128xf32, #tpu.memory_space<vmem>>, vector<1x1x128xf32>
    %41 = vector.shape_cast %40 : vector<1x1x128xf32> to vector<1x128xf32>
    %42 = vector.shape_cast %39 : vector<1x128xf32> to vector<1x1x128xf32>
    tpu.vector_store %arg8[%c0_27, %c0_28, %c0_29], %42 {strides = array<i32>} : memref<1x1x128xf32, #tpu.memory_space<vmem>>, vector<1x1x128xf32>,
    return
  }
  func.func @transform_0(%arg0: i32) -> (i32, i32, i32) {
    %c0_i32 = arith.constant 0 : i32
    %c0_i32_0 = arith.constant 0 : i32
    %c0_i32_1 = arith.constant 0 : i32
    return %arg0, %c0_i32, %c0_i32_0 : i32, i32, i32
  }
  func.func @transform_1(%arg0: i32) -> (i32, i32, i32) {
    %c0_i32 = arith.constant 0 : i32
    %c0_i32_0 = arith.constant 0 : i32
    %c0_i32_1 = arith.constant 0 : i32
    return %arg0, %c0_i32, %c0_i32_0 : i32, i32, i32
  }
  func.func @transform_2(%arg0: i32) -> (i32, i32, i32) {
    %c0_i32 = arith.constant 0 : i32
    %c0_i32_0 = arith.constant 0 : i32
    %c0_i32_1 = arith.constant 0 : i32
    return %arg0, %c0_i32, %c0_i32_0 : i32, i32, i32
  }
  func.func @transform_3(%arg0: i32) -> (i32, i32, i32) {
    %c0_i32 = arith.constant 0 : i32
    %c0_i32_0 = arith.constant 0 : i32
    %c0_i32_1 = arith.constant 0 : i32
    return %arg0, %c0_i32, %c0_i32_0 : i32, i32, i32
  }
  func.func @transform_4(%arg0: i32) -> (i32, i32) {
    %c0_i32 = arith.constant 0 : i32
    %c0_i32_0 = arith.constant 0 : i32
    %c0_i32_1 = arith.constant 0 : i32
    return %c0_i32, %c0_i32_0 : i32, i32
  }
  func.func @transform_5(%arg0: i32) -> (i32, i32, i32) {
    %c0_i32 = arith.constant 0 : i32
    %c0_i32_0 = arith.constant 0 : i32
    %c0_i32_1 = arith.constant 0 : i32
    return %arg0, %c0_i32, %c0_i32_0 : i32, i32, i32
  }
  func.func @transform_6(%arg0: i32) -> (i32, i32, i32) {
    %c0_i32 = arith.constant 0 : i32
    %c0_i32_0 = arith.constant 0 : i32
    %c0_i32_1 = arith.constant 0 : i32
    return %arg0, %c0_i32, %c0_i32_0 : i32, i32, i32
  }
  func.func @transform_7(%arg0: i32) -> (i32, i32, i32) {
    %c0_i32 = arith.constant 0 : i32
    %c0_i32_0 = arith.constant 0 : i32
    %c0_i32_1 = arith.constant 0 : i32
    return %arg0, %c0_i32, %c0_i32_0 : i32, i32, i32
  }
}

</mosaic_0001>

<bundles_post_ra>
// kernel: receiver_forward.2
= control target key start
LH: loop header
LB: loop body
LE: loop exit
PB: predicated region body
PF: predicated region fallthrough
CT: control target
= control target key end

     0   :  { %v2663_v0 = vmov 1   ;;  %v2660_v1 = vmov 0   ;;  %v2658_v9 = vmov 2   ;;  %v2654_v13 = vmov 3   ;;  %s2645_s0 = inlined_call_operand.vmem [shape: s32[128,8], index: 0, kind: input, shape index: {}]   ;;  %s2646_s1 = inlined_call_operand.vmem [shape: bf16[128,128], index: 1, kind: input, shape index: {}]   ;;  %s2647_s3 = inlined_call_operand.vmem [shape: bf16[128,128], index: 3, kind: input, shape index: {}]   ;;  %s2648_s2 = inlined_call_operand.vmem [shape: f32[1,128], index: 2, kind: input, shape index: {}]   ;;  %s2649_s4 = inlined_call_operand.vmem [shape: f32[128,128], index: 4, kind: output, shape index: {0}]   ;;  %s2650_s5 = inlined_call_operand.vmem [shape: f32[128,128], index: 5, kind: output, shape index: {1}]  }
   0x1   :  { %1586 = vset.pattern.permute.xlu1 %v2663_v0  ;;  %1585 = vset.pattern.permute.xlu0 %v2660_v1  ;;  %v1712_v2 = vld [vmem:[%s2645_s0] sm:$0xff]  ;;  %v1719_v3 = vld [vmem:[%s2645_s0 + $0x8] sm:$0xff]  ;;  %v1726_v4 = vld [vmem:[%s2645_s0 + $0x10] sm:$0xff]  ;;  %v2653_v15 = vmov 4   ;;  %v2661_v19 = vmov 5   ;;  %v2656_v21 = vmov 6   ;;  %v36_v41 = vlaneseq }
   0x2   :  { %151 = vperm.xlu1 %1586, %v1712_v2   ;;  %39 = vperm.xlu0 %1585, %v1712_v2   ;;  %v1731_v5 = vld [vmem:[%s2645_s0 + $0x18] sm:$0xff]  ;;  %v1739_v6 = vld [vmem:[%s2645_s0 + $0x20] sm:$0xff]  ;;  %v1746_v7 = vld [vmem:[%s2645_s0 + $0x30] sm:$0xff]  ;;  %v2651_v22 = vmov 7   ;;  %v1676_v50 = vmov 0.0  }
   0x3   :  { %v1753_v8 = vld [vmem:[%s2645_s0 + $0x48] sm:$0xff]  ;;  %v1761_v10 = vld [vmem:[%s2645_s0 + $0x58] sm:$0xff]  ;;  %v1768_v11 = vld [vmem:[%s2645_s0 + $0x60] sm:$0xff]  ;;  %v1931_v44 = vand.u32 127, %v36_v41 }
   0x4   :  { %v1775_v12 = vld [vmem:[%s2645_s0 + $0x70] sm:$0xff]  ;;  %v1786_v14 = vld [vmem:[%s2645_s0 + $0x28] sm:$0xff]  ;;  %v1794_v16 = vld [vmem:[%s2645_s0 + $0x38] sm:$0xff] }
   0x5   :  { %v1801_v17 = vld [vmem:[%s2645_s0 + $0x68] sm:$0xff]  ;;  %v1808_v18 = vld [vmem:[%s2645_s0 + $0x78] sm:$0xff]  ;;  %v1824_v20 = vld [vmem:[%s2645_s0 + $0x50] sm:$0xff] }
   0x6   :  { %154 = vperm.xlu1 %1586, %v1719_v3   ;;  %42 = vperm.xlu0 %1585, %v1719_v3   ;;  %v1648_v32 = vld [vmem:[%s2646_s1] sm:$0xff]   ;;  %v1649_v36 = vld [vmem:[%s2646_s1 + $0x8] sm:$0xff]   ;;  %v1650_v39 = vld [vmem:[%s2646_s1 + $0x10] sm:$0xff]  }
   0x7   :  { %v1899_v33 = vld [vmem:[%s2645_s0 + $0x40] sm:$0xff]  ;;  %1512 = vmatprep.subr.bf16.mxu0 %v1648_v32  ;;  %v1651_v43 = vld [vmem:[%s2646_s1 + $0x18] sm:$0xff]   ;;  %v1653_v49 = vld [vmem:[%s2646_s1 + $0x28] sm:$0xff]  }
   0x8   :  { %1513 = vmatpush3.bf16.msra.mxu0 %v1648_v32  ;;  %v1652_v47 = vld [vmem:[%s2646_s1 + $0x20] sm:$0xff]   ;;  %v1654_v55 = vld [vmem:[%s2646_s1 + $0x30] sm:$0xff]   ;;  %v1655_v58 = vld [vmem:[%s2646_s1 + $0x38] sm:$0xff]  }
   0x9   :  { %1514 = vmatprep.subr.bf16.mxu0 %v1649_v36 }
   0xa   :  { %1587 = vset.pattern.permute.xlu1 %v2660_v1  ;;  %45 = vperm.xlu0 %1585, %v1726_v4  }
   0xb   :  { %48 = vperm.xlu1 %1587, %v1731_v5  }
   0xc   :  { %1515 = vmatpush3.bf16.msra.mxu0 %v1649_v36 }
   0xd   :  { %1516 = vmatprep.subr.bf16.mxu0 %v1650_v39 }
   0xe   :  { %51 = vperm.xlu0 %1585, %v1739_v6  }
   0xf   :  { %1588 = vset.pattern.permute.xlu1 %v2663_v0 }
  0x10   :  { %160 = vperm.xlu1 %1588, %v1731_v5   ;;  %1517 = vmatpush3.bf16.msra.mxu0 %v1650_v39 }
  0x11   :  { %1518 = vmatprep.subr.bf16.mxu0 %v1651_v43 }
  0x12   :  { %57 = vperm.xlu0 %1585, %v1746_v7  }
  0x14   :  { %1589 = vset.pattern.permute.xlu1 %v2658_v9  ;;  %1519 = vmatpush3.bf16.msra.mxu0 %v1651_v43 }
  0x15   :  { %263 = vperm.xlu1 %1589, %v1712_v2   ;;  %1520 = vmatprep.subr.bf16.mxu0 %v1652_v47 }
  0x16   :  { %66 = vperm.xlu0 %1585, %v1753_v8  }
  0x18   :  { %1521 = vmatpush3.bf16.msra.mxu0 %v1652_v47 }
  0x19   :  { %269 = vperm.xlu1 %1589, %v1726_v4   ;;  %1522 = vmatprep.subr.bf16.mxu0 %v1653_v49 }
  0x1a   :  { %72 = vperm.xlu0 %1585, %v1761_v10  }
  0x1c   :  { %1523 = vmatpush3.bf16.msra.mxu0 %v1653_v49 }
  0x1d   :  { %272 = vperm.xlu1 %1589, %v1731_v5   ;;  %1524 = vmatprep.subr.bf16.mxu0 %v1654_v55 }
  0x1e   :  { %75 = vperm.xlu0 %1585, %v1768_v11  }
  0x20   :  { %1525 = vmatpush3.bf16.msra.mxu0 %v1654_v55 }
  0x21   :  { %1590 = vset.pattern.permute.xlu1 %v2654_v13  ;;  %1526 = vmatprep.subr.bf16.mxu0 %v1655_v58 }
  0x22   :  { %378 = vperm.xlu1 %1590, %v1719_v3   ;;  %81 = vperm.xlu0 %1585, %v1775_v12  }
  0x24   :  { %1527 = vmatpush3.bf16.msra.mxu0 %v1655_v58 }
  0x26   :  { %381 = vperm.xlu1 %1590, %v1726_v4   ;;  %1625 = vset.pattern.permute.xlu0 %v2663_v0 }
  0x27   :  { %157 = vperm.xlu0 %1625, %v1726_v4  }
  0x2a   :  { %1591 = vset.pattern.permute.xlu1 %v2653_v15 }
  0x2b   :  { %487 = vperm.xlu1 %1591, %v1712_v2   ;;  %166 = vperm.xlu0 %1625, %v1786_v14  }
  0x2f   :  { %493 = vperm.xlu1 %1591, %v1726_v4   ;;  %172 = vperm.xlu0 %1625, %v1794_v16  }
  0x33   :  { %496 = vperm.xlu1 %1591, %v1731_v5   ;;  %190 = vperm.xlu0 %1625, %v1801_v17  }
  0x37   :  { %1592 = vset.pattern.permute.xlu1 %v2660_v1  ;;  %196 = vperm.xlu0 %1625, %v1808_v18  }
  0x38   :  { %54 = vperm.xlu1 %1592, %v1786_v14  }
  0x3b   :  { %1628 = vset.pattern.permute.xlu0 %v2658_v9 }
  0x3c   :  { %1593 = vset.pattern.permute.xlu1 %v2663_v0  ;;  %266 = vperm.xlu0 %1628, %v1719_v3  }
  0x3d   :  { %163 = vperm.xlu1 %1593, %v1739_v6  }
  0x40   :  { %275 = vperm.xlu0 %1628, %v1739_v6  }
  0x41   :  { %1594 = vset.pattern.permute.xlu1 %v2661_v19 }
  0x42   :  { %599 = vperm.xlu1 %1594, %v1712_v2  }
  0x44   :  { %290 = vperm.xlu0 %1628, %v1753_v8  }
  0x46   :  { %602 = vperm.xlu1 %1594, %v1719_v3  }
  0x48   :  { %293 = vperm.xlu0 %1628, %v1824_v20  }
  0x4a   :  { %1595 = vset.pattern.permute.xlu1 %v2660_v1 }
  0x4b   :  { %60 = vperm.xlu1 %1595, %v1794_v16  }
  0x4c   :  { %299 = vperm.xlu0 %1628, %v1768_v11  }
  0x4f   :  { %1596 = vset.pattern.permute.xlu1 %v2663_v0 }
  0x50   :  { %169 = vperm.xlu1 %1596, %v1746_v7   ;;  %1630 = vset.pattern.permute.xlu0 %v2654_v13 }
  0x51   :  { %375 = vperm.xlu0 %1630, %v1712_v2  }
  0x54   :  { %1597 = vset.pattern.permute.xlu1 %v2661_v19 }
  0x55   :  { %605 = vperm.xlu1 %1597, %v1726_v4   ;;  %384 = vperm.xlu0 %1630, %v1731_v5  }
  0x59   :  { %608 = vperm.xlu1 %1597, %v1731_v5   ;;  %387 = vperm.xlu0 %1630, %v1739_v6  }
  0x5d   :  { %1598 = vset.pattern.permute.xlu1 %v2658_v9  ;;  %402 = vperm.xlu0 %1630, %v1753_v8  }
  0x5e   :  { %278 = vperm.xlu1 %1598, %v1786_v14  }
  0x61   :  { %405 = vperm.xlu0 %1630, %v1824_v20  }
  0x62   :  { %1599 = vset.pattern.permute.xlu1 %v2656_v21 }
  0x63   :  { %711 = vperm.xlu1 %1599, %v1712_v2  }
  0x65   :  { %411 = vperm.xlu0 %1630, %v1768_v11  }
  0x67   :  { %1600 = vset.pattern.permute.xlu1 %v2658_v9 }
  0x68   :  { %281 = vperm.xlu1 %1600, %v1746_v7  }
  0x69   :  { %1635 = vset.pattern.permute.xlu0 %v2651_v22 }
  0x6a   :  { %826 = vperm.xlu0 %1635, %v1719_v3  }
  0x6c   :  { %284 = vperm.xlu1 %1600, %v1794_v16  }
  0x6e   :  { %829 = vperm.xlu0 %1635, %v1726_v4  }
  0x70   :  { %1601 = vset.pattern.permute.xlu1 %v2656_v21 }
  0x71   :  { %720 = vperm.xlu1 %1601, %v1731_v5  }
  0x72   :  { %841 = vperm.xlu0 %1635, %v1746_v7  }
  0x75   :  { %1602 = vset.pattern.permute.xlu1 %v2654_v13 }
  0x76   :  { %390 = vperm.xlu1 %1602, %v1786_v14   ;;  %850 = vperm.xlu0 %1635, %v1753_v8  }
  0x7a   :  { %1603 = vset.pattern.permute.xlu1 %v2651_v22  ;;  %853 = vperm.xlu0 %1635, %v1824_v20  }
  0x7b   :  { %823 = vperm.xlu1 %1603, %v1712_v2  }
  0x7e   :  { %1639 = vset.pattern.permute.xlu0 %v2653_v15 }
  0x7f   :  { %1604 = vset.pattern.permute.xlu1 %v2654_v13  ;;  %490 = vperm.xlu0 %1639, %v1719_v3  }
  0x80   :  { %393 = vperm.xlu1 %1604, %v1746_v7  }
  0x81   :  { %v1866_v23 = vpop.permute.xlu1 %151  ;;  %v1868_v24 = vpop.permute.xlu0 %39 }
  0x82   :  { %vm198_vm8 = vcmp.eq.s32.totalorder %v1866_v23, %v1931_v44  ;;  %vm86_vm9 = vcmp.eq.s32.totalorder %v1868_v24, %v1931_v44 }
  0x83   :  { %499 = vperm.xlu0 %1639, %v1739_v6   ;;  %v1351_v58 = vsel %vm198_vm8, 1.0, %v1676_v50 }
  0x84   :  { %396 = vperm.xlu1 %1604, %v1794_v16  }
  0x85   :  { %v1872_v25 = vpop.permute.xlu1 %154  ;;  %v1874_v26 = vpop.permute.xlu0 %42 }
  0x86   :  { %vm199_vm2 = vcmp.eq.s32.totalorder %v1872_v25, %v1931_v44  ;;  %vm87_vm3 = vcmp.eq.s32.totalorder %v1874_v26, %v1931_v44 }
  0x87   :  { %508 = vperm.xlu0 %1639, %v1794_v16  }
  0x88   :  { %1605 = vset.pattern.permute.xlu1 %v2651_v22 }
  0x89   :  { %832 = vperm.xlu1 %1605, %v1731_v5   ;;  %v46_v27 = vpop.permute.xlu0 %45 }
  0x8a   :  { %v1879_v28 = vpop.permute.xlu1 %48  ;;  %vm88_vm0 = vcmp.eq.s32.totalorder %v46_v27, %v1931_v44 }
  0x8b   :  { %514 = vperm.xlu0 %1639, %v1753_v8   ;;  %v1337_v51 = vsel %vm88_vm0, 1.0, %v1676_v50 }
  0x8d   :  { %1606 = vset.pattern.permute.xlu1 %v2653_v15  ;;  %v1883_v29 = vpop.permute.xlu0 %51 }
  0x8e   :  { %502 = vperm.xlu1 %1606, %v1786_v14   ;;  %vm90_vm4 = vcmp.eq.s32.totalorder %v1883_v29, %v1931_v44 }
  0x8f   :  { %v1886_v30 = vpop.permute.xlu1 %160  ;;  %523 = vperm.xlu0 %1639, %v1768_v11   ;;  %v1339_v25 = vsel %vm90_vm4, 1.0, %v1676_v50  ;;  %vm89_vm4 = vcmp.eq.s32.totalorder %v1879_v28, %v1931_v44  ;;  %v2671_v28 = vmov 1  }
  0x91   :  { %v1889_v31 = vpop.permute.xlu0 %57 }
  0x92   :  { %505 = vperm.xlu1 %1606, %v1746_v7  }
  0x93   :  { %532 = vperm.xlu0 %1639, %v1808_v18  }
  0x94   :  { %v1901_v34 = vpop.permute.xlu1 %263 }
  0x95   :  { %v1903_v35 = vpop.permute.xlu0 %66  ;;  %vm310_vm10 = vcmp.eq.s32.totalorder %v1901_v34, %v1931_v44 }
  0x96   :  { %1607 = vset.pattern.permute.xlu1 %v2660_v1 }
  0x97   :  { %63 = vperm.xlu1 %1607, %v1899_v33   ;;  %1642 = vset.pattern.permute.xlu0 %v2661_v19 }
  0x98   :  { %v1911_v37 = vpop.permute.xlu1 %269  ;;  %611 = vperm.xlu0 %1642, %v1739_v6  }
  0x99   :  { %v1914_v38 = vpop.permute.xlu0 %72 }
  0x9b   :  { %1608 = vset.pattern.permute.xlu1 %v2663_v0 }
  0x9c   :  { %175 = vperm.xlu1 %1608, %v1899_v33   ;;  %v1921_v40 = vpop.permute.xlu1 %272  ;;  %617 = vperm.xlu0 %1642, %v1746_v7  }
  0x9d   :  { %v1924_v42 = vpop.permute.xlu0 %75  ;;  %vm313_vm8 = vcmp.eq.s32.totalorder %v1921_v40, %v1931_v44 }
  0xa0   :  { %178 = vperm.xlu1 %1608, %v1753_v8   ;;  %638 = vperm.xlu0 %1642, %v1801_v17  }
  0xa1   :  { %v1933_v45 = vpop.permute.xlu1 %378  ;;  %v1935_v46 = vpop.permute.xlu0 %81 }
  0xa2   :  { %2664 = vst [vmem:[#allocation2_spill] sm:$0xff] %v1935_v46 }
  0xa4   :  { %1609 = vset.pattern.permute.xlu1 %v2661_v19  ;;  %1644 = vset.pattern.permute.xlu0 %v2656_v21 }
  0xa5   :  { %614 = vperm.xlu1 %1609, %v1786_v14   ;;  %v1944_v48 = vpop.permute.xlu1 %381  ;;  %714 = vperm.xlu0 %1644, %v1719_v3   ;;  %v1352_v3 = vsel %vm199_vm2, 1.0, %v1676_v50 }
  0xa6   :  { %v158_v52 = vpop.permute.xlu0 %157 }
  0xa7   :  { %vm200_vm1 = vcmp.eq.s32.totalorder %v158_v52, %v1931_v44 }
  0xa8   :  { %v1353_v53 = vsel %vm200_vm1, 1.0, %v1676_v50 }
  0xa9   :  { %v1953_v54 = vadd.f32 %v1353_v53, %v1337_v51  ;;  %1610 = vset.pattern.permute.xlu1 %v2660_v1  ;;  %717 = vperm.xlu0 %1644, %v1726_v4   ;;  %v1336_v4 = vsel %vm87_vm3, 1.0, %v1676_v50  ;;  %vm201_vm3 = vcmp.eq.s32.totalorder %v1886_v30, %v1931_v44  ;;  %v1338_v30 = vsel %vm89_vm4, 1.0, %v1676_v50 }
  0xaa   :  { %69 = vperm.xlu1 %1610, %v1824_v20   ;;  %v1961_v56 = vpop.permute.xlu1 %487  ;;  %v1963_v57 = vpop.permute.xlu0 %166 }
  0xad   :  { %729 = vperm.xlu0 %1644, %v1746_v7   ;;  %v247_v7 = vadd.f32 %v1352_v3, %v1336_v4  ;;  %v1335_v3 = vsel %vm86_vm9, 1.0, %v1676_v50  ;;  %v1367_v4 = vsel %vm310_vm10, 1.0, %v1676_v50  ;;  %vm424_vm9 = vcmp.eq.s32.totalorder %v1944_v48, %v1931_v44 }
  0xae   :  { %1611 = vset.pattern.permute.xlu1 %v2663_v0  ;;  %v1970_v59 = vpop.permute.xlu1 %493  ;;  %v1972_v60 = vpop.permute.xlu0 %172  ;;  %v246_v23 = vadd.f32 %v1351_v58, %v1335_v3  ;;  %v1370_v48 = vsel %vm313_vm8, 1.0, %v1676_v50 }
  0xaf   :  { %181 = vperm.xlu1 %1611, %v1824_v20   ;;  %vm205_vm13 = vcmp.eq.s32.totalorder %v1972_v60, %v1931_v44  ;;  %vm536_vm10 = vcmp.eq.s32.totalorder %v1970_v59, %v1931_v44 }
  0xb0   :  { %v1401_v59 = vsel %vm536_vm10, 1.0, %v1676_v50 }
  0xb1   :  { %738 = vperm.xlu0 %1644, %v1753_v8  }
  0xb2   :  { %v1976_v61 = vpop.permute.xlu1 %496  ;;  %v1978_v62 = vpop.permute.xlu0 %190 }
  0xb3   :  { %184 = vperm.xlu1 %1611, %v1761_v10  }
  0xb5   :  { %741 = vperm.xlu0 %1644, %v1824_v20  }
  0xb6   :  { %v1986_v63 = vpop.permute.xlu0 %196 }
  0xb7   :  { %2665 = vst [vmem:[#allocation3_spill] sm:$0xff] %v1986_v63  ;;  %1612 = vset.pattern.permute.xlu1 %v2661_v19  ;;  %v1989_v2 = vpop.permute.xlu1 %54 }
  0xb8   :  { %620 = vperm.xlu1 %1612, %v1794_v16  }
  0xb9   :  { %747 = vperm.xlu0 %1644, %v1768_v11  }
  0xbb   :  { %v267_v5 = vpop.permute.xlu0 %266 }
  0xbc   :  { %vm311_vm5 = vcmp.eq.s32.totalorder %v267_v5, %v1931_v44  ;;  %1613 = vset.pattern.permute.xlu1 %v2658_v9  ;;  %v164_v26 = vpop.permute.xlu1 %163 }
  0xbd   :  { %v1368_v27 = vsel %vm311_vm5, 1.0, %v1676_v50  ;;  %vm202_vm6 = vcmp.eq.s32.totalorder %v164_v26, %v1931_v44  ;;  %287 = vperm.xlu1 %1613, %v1899_v33   ;;  %756 = vperm.xlu0 %1644, %v1808_v18   ;;  %vm312_vm5 = vcmp.eq.s32.totalorder %v1911_v37, %v1931_v44 }
  0xbe   :  { %v2004_v29 = vadd.f32 %v1368_v27, %v247_v7  ;;  %v1355_v32 = vsel %vm202_vm6, 1.0, %v1676_v50  ;;  %v358_v7 = vadd.f32 %v1367_v4, %v246_v23  ;;  %vm92_vm6 = vcmp.eq.s32.totalorder %v1889_v31, %v1931_v44 }
  0xbf   :  { %v250_v36 = vadd.f32 %v1355_v32, %v1339_v25  ;;  %v276_v39 = vpop.permute.xlu0 %275  ;;  %v1341_v40 = vsel %vm92_vm6, 1.0, %v1676_v50 }
  0xc0   :  { %vm314_vm7 = vcmp.eq.s32.totalorder %v276_v39, %v1931_v44 }
  0xc1   :  { %v1371_v41 = vsel %vm314_vm7, 1.0, %v1676_v50  ;;  %1614 = vset.pattern.permute.xlu1 %v2656_v21  ;;  %v2010_v43 = vpop.permute.xlu1 %599  ;;  %1647 = vset.pattern.permute.xlu0 %v2651_v22 }
  0xc2   :  { %v362_v47 = vadd.f32 %v1371_v41, %v250_v36  ;;  %723 = vperm.xlu1 %1614, %v1739_v6   ;;  %862 = vperm.xlu0 %1647, %v1801_v17  }
  0xc3   :  { %v2015_v49 = vpop.permute.xlu0 %290 }
  0xc4   :  { %vm319_vm6 = vcmp.eq.s32.totalorder %v2015_v49, %v1931_v44 }
  0xc5   :  { %v2017_v51 = vpop.permute.xlu1 %602 }
  0xc6   :  { %726 = vperm.xlu1 %1614, %v1786_v14  }
  0xc7   :  { %v2020_v52 = vpop.permute.xlu0 %293 }
  0xca   :  { %1615 = vset.pattern.permute.xlu1 %v2658_v9  ;;  %v61_v53 = vpop.permute.xlu1 %60 }
  0xcb   :  { %296 = vperm.xlu1 %1615, %v1761_v10   ;;  %v2030_v55 = vpop.permute.xlu0 %299  ;;  %vm93_vm14 = vcmp.eq.s32.totalorder %v61_v53, %v1931_v44  ;;  %v2669_v53 = vmov 5  }
  0xcc   :  { %v1342_v9 = vsel %vm93_vm14, 1.0, %v1676_v50 }
  0xcf   :  { %1616 = vset.pattern.permute.xlu1 %v2656_v21  ;;  %v2036_v24 = vpop.permute.xlu1 %169  ;;  %v1358_v21 = vsel %vm205_vm13, 1.0, %v1676_v50  ;;  %vm423_vm13 = vcmp.eq.s32.totalorder %v1933_v45, %v1931_v44 }
  0xd0   :  { %732 = vperm.xlu1 %1616, %v1794_v16   ;;  %v376_v5 = vpop.permute.xlu0 %375  ;;  %vm204_vm7 = vcmp.eq.s32.totalorder %v2036_v24, %v1931_v44 }
  0xd1   :  { %vm422_vm11 = vcmp.eq.s32.totalorder %v376_v5, %v1931_v44 }
  0xd2   :  { %v1383_v34 = vsel %vm422_vm11, 1.0, %v1676_v50 }
  0xd3   :  { %v2041_v25 = vadd.f32 %v1383_v34, %v358_v7 }
  0xd4   :  { %1617 = vset.pattern.permute.xlu1 %v2654_v13  ;;  %v2044_v26 = vpop.permute.xlu1 %605  ;;  %v2046_v27 = vpop.permute.xlu0 %384 }
  0xd5   :  { %399 = vperm.xlu1 %1617, %v1899_v33  }
  0xd8   :  { %v2049_v32 = vpop.permute.xlu1 %608  ;;  %v388_v36 = vpop.permute.xlu0 %387 }
  0xd9   :  { %vm426_vm12 = vcmp.eq.s32.totalorder %v388_v36, %v1931_v44  ;;  %1618 = vset.pattern.permute.xlu1 %v2651_v22 }
  0xda   :  { %v1387_v39 = vsel %vm426_vm12, 1.0, %v1676_v50  ;;  %835 = vperm.xlu1 %1618, %v1739_v6   ;;  %vm95_vm12 = vcmp.eq.s32.totalorder %v1903_v35, %v1931_v44 }
  0xdb   :  { %v474_v41 = vadd.f32 %v1387_v39, %v362_v47 }
  0xdc   :  { %v2055_v58 = vpop.permute.xlu0 %402 }
  0xdd   :  { %v2057_v3 = vpop.permute.xlu1 %278 }
  0xde   :  { %838 = vperm.xlu1 %1618, %v1786_v14  }
  0xe0   :  { %v2060_v4 = vpop.permute.xlu0 %405 }
  0xe2   :  { %1619 = vset.pattern.permute.xlu1 %v2654_v13  ;;  %v2063_v23 = vpop.permute.xlu1 %711 }
  0xe3   :  { %408 = vperm.xlu1 %1619, %v1761_v10  }
  0xe4   :  { %v2066_v5 = vpop.permute.xlu0 %411 }
  0xe5   :  { %2666 = vst [vmem:[#allocation4_spill] sm:$0xff] %v2066_v5 }
  0xe7   :  { %1620 = vset.pattern.permute.xlu1 %v2651_v22  ;;  %v2069_v6 = vpop.permute.xlu1 %281 }
  0xe8   :  { %844 = vperm.xlu1 %1620, %v1794_v16   ;;  %vm316_vm11 = vcmp.eq.s32.totalorder %v2069_v6, %v1931_v44 }
  0xe9   :  { %v2072_v47 = vpop.permute.xlu0 %826  ;;  %v1373_v6 = vsel %vm316_vm11, 1.0, %v1676_v50  ;;  %vm758_vm11 = vcmp.eq.s32.totalorder %v2063_v23, %v1931_v44 }
  0xea   :  { %v1431_v49 = vsel %vm758_vm11, 1.0, %v1676_v50 }
  0xeb   :  { %v285_v7 = vpop.permute.xlu1 %284 }
  0xec   :  { %1621 = vset.pattern.permute.xlu1 %v2653_v15  ;;  %vm317_vm15 = vcmp.eq.s32.totalorder %v285_v7, %v1931_v44 }
  0xed   :  { %511 = vperm.xlu1 %1621, %v1899_v33   ;;  %v2076_v14 = vpop.permute.xlu0 %829  ;;  %v1374_v19 = vsel %vm317_vm15, 1.0, %v1676_v50  ;;  %vm534_vm15 = vcmp.eq.s32.totalorder %v1961_v56, %v1931_v44 }
  0xf0   :  { %v2078_v34 = vpop.permute.xlu1 %720 }
  0xf1   :  { %517 = vperm.xlu1 %1621, %v1824_v20   ;;  %v2081_v36 = vpop.permute.xlu0 %841 }
  0xf5   :  { %520 = vperm.xlu1 %1621, %v1761_v10   ;;  %v2084_v39 = vpop.permute.xlu1 %390  ;;  %v2086_v16 = vpop.permute.xlu0 %850 }
  0xf6   :  { %2667 = vst [vmem:[#allocation5_spill] sm:$0xff] %v2086_v16 }
  0xf9   :  { %1622 = vset.pattern.permute.xlu1 %v2660_v1  ;;  %v2089_v22 = vpop.permute.xlu0 %853 }
  0xfa   :  { %2668 = vst [vmem:[#allocation6_spill] sm:$0xff] %v2089_v22  ;;  %78 = vperm.xlu1 %1622, %v1801_v17   ;;  %v2092_v15 = vpop.permute.xlu1 %823  ;;  %v253_v22 = vadd.f32 %v1358_v21, %v1342_v9 }
  0xfe   :  { %1623 = vset.pattern.permute.xlu1 %v2663_v0  ;;  %v2099_v13 = vpop.permute.xlu0 %490  ;;  %v365_v0 = vadd.f32 %v1374_v19, %v253_v22 }
  0xff   :  { %187 = vperm.xlu1 %1623, %v1768_v11   ;;  %v2104_v1 = vpop.permute.xlu1 %393  ;;  %vm535_vm8 = vcmp.eq.s32.totalorder %v2099_v13, %v1931_v44 }
 0x100   :  { %vm428_vm14 = vcmp.eq.s32.totalorder %v2104_v1, %v1931_v44  ;;  %v1344_v1 = vsel %vm95_vm12, 1.0, %v1676_v50  ;;  %v1400_v13 = vsel %vm535_vm8, 1.0, %v1676_v50  ;;  %vm648_vm12 = vcmp.eq.s32.totalorder %v2044_v26, %v1931_v44 }
 0x101   :  { %v1389_v56 = vsel %vm428_vm14, 1.0, %v1676_v50  ;;  %vm431_vm14 = vcmp.eq.s32.totalorder %v2055_v58, %v1931_v44  ;;  %vm876_vm8 = vcmp.eq.s32.totalorder %v2081_v36, %v1931_v44 }
 0x102   :  { %v500_v60 = vpop.permute.xlu0 %499  ;;  %v1453_v36 = vsel %vm876_vm8, 1.0, %v1676_v50 }
 0x103   :  { %vm538_vm0 = vcmp.eq.s32.totalorder %v500_v60, %v1931_v44  ;;  %1624 = vset.pattern.permute.xlu1 %v2669_v53  ;;  %v397_v7 = vpop.permute.xlu1 %396  ;;  %v2670_v60 = vmov 0  }
 0x104   :  { %v1403_v46 = vsel %vm538_vm0, 1.0, %v1676_v50  ;;  %vm429_vm1 = vcmp.eq.s32.totalorder %v397_v7, %v1931_v44  ;;  %623 = vperm.xlu1 %1624, %v1899_v33   ;;  %vm537_vm0 = vcmp.eq.s32.totalorder %v1976_v61, %v1931_v44 }
 0x105   :  { %v2112_v63 = vadd.f32 %v1403_v46, %v474_v41  ;;  %v1390_v11 = vsel %vm429_vm1, 1.0, %v1676_v50  ;;  %v1354_v46 = vsel %vm201_vm3, 1.0, %v1676_v50  ;;  %v1369_v41 = vsel %vm312_vm5, 1.0, %v1676_v50 }
 0x106   :  { %v477_v16 = vadd.f32 %v1390_v11, %v365_v0  ;;  %v509_v5 = vpop.permute.xlu0 %508  ;;  %v249_v24 = vadd.f32 %v1354_v46, %v1338_v30  ;;  %v1399_v46 = vsel %vm534_vm15, 1.0, %v1676_v50  ;;  %vm425_vm3 = vcmp.eq.s32.totalorder %v2046_v27, %v1931_v44 }
 0x107   :  { %vm541_vm2 = vcmp.eq.s32.totalorder %v509_v5, %v1931_v44  ;;  %v360_v5 = vadd.f32 %v1369_v41, %v1953_v54  ;;  %v1385_v54 = vsel %vm424_vm9, 1.0, %v1676_v50  ;;  %v1402_v41 = vsel %vm537_vm0, 1.0, %v1676_v50 }
 0x108   :  { %v1406_v9 = vsel %vm541_vm2, 1.0, %v1676_v50  ;;  %626 = vperm.xlu1 %1624, %v1753_v8   ;;  %v2118_v21 = vpop.permute.xlu1 %832  ;;  %v361_v11 = vadd.f32 %v1370_v48, %v249_v24  ;;  %vm646_vm5 = vcmp.eq.s32.totalorder %v2010_v43, %v1931_v44  ;;  %vm870_vm0 = vcmp.eq.s32.totalorder %v2092_v15, %v1931_v44 }
 0x109   :  { %v2120_v19 = vadd.f32 %v1406_v9, %v477_v16  ;;  %v1357_v16 = vsel %vm204_vm7, 1.0, %v1676_v50  ;;  %v472_v7 = vadd.f32 %v1385_v54, %v360_v5  ;;  %v1384_v9 = vsel %vm423_vm13, 1.0, %v1676_v50 }
 0x10a   :  { %v2122_v22 = vpop.permute.xlu0 %514  ;;  %v252_v35 = vadd.f32 %v1357_v16, %v1341_v40  ;;  %v471_v5 = vadd.f32 %v1384_v9, %v2004_v29  ;;  %vm647_vm7 = vcmp.eq.s32.totalorder %v2017_v51, %v1931_v44  ;;  %v1386_v40 = vsel %vm425_vm3, 1.0, %v1676_v50 }
 0x10b   :  { %v2179_v30 = vadd.f32 %v1401_v59, %v472_v7  ;;  %v582_v16 = vadd.f32 %v1399_v46, %v2041_v25  ;;  %v1415_v25 = vsel %vm646_vm5, 1.0, %v1676_v50  ;;  %v2672_v9 = vmov 2  }
 0x10c   :  { %1626 = vset.pattern.permute.xlu1 %v2670_v60  ;;  %v364_v61 = vadd.f32 %v1373_v6, %v252_v35  ;;  %v1376_v35 = vsel %vm319_vm6, 1.0, %v1676_v50  ;;  %v1416_v43 = vsel %vm647_vm7, 1.0, %v1676_v50  ;;  %vm649_vm13 = vcmp.eq.s32.totalorder %v2049_v32, %v1931_v44 }
 0x10d   :  { %84 = vperm.xlu1 %1626, %v1808_v18   ;;  %v2128_v0 = vpop.permute.xlu1 %502  ;;  %v583_v51 = vadd.f32 %v1400_v13, %v471_v5  ;;  %v694_v46 = vadd.f32 %v1415_v25, %v582_v16  ;;  %vm761_vm3 = vcmp.eq.s32.totalorder %v2078_v34, %v1931_v44  ;;  %v1418_v15 = vsel %vm649_vm13, 1.0, %v1676_v50 }
 0x10e   :  { %v2134_v8 = vpop.permute.xlu0 %523  ;;  %vm872_vm6 = vcmp.eq.s32.totalorder %v2076_v14, %v1931_v44  ;;  %vm432_vm13 = vcmp.eq.s32.totalorder %v2060_v4, %v1931_v44  ;;  %v2675_v4 = vmov 7  }
 0x10f   :  { %v806_v23 = vadd.f32 %v1431_v49, %v694_v46  ;;  %v695_v34 = vadd.f32 %v1416_v43, %v583_v51 }
 0x111   :  { %1627 = vset.pattern.permute.xlu1 %v2671_v28  ;;  %v506_v37 = vpop.permute.xlu1 %505 }
 0x112   :  { %193 = vperm.xlu1 %1627, %v1775_v12   ;;  %v2154_v31 = vpop.permute.xlu0 %532  ;;  %vm540_vm1 = vcmp.eq.s32.totalorder %v506_v37, %v1931_v44 }
 0x113   :  { %v1405_v28 = vsel %vm540_vm1, 1.0, %v1676_v50  ;;  %vm543_vm1 = vcmp.eq.s32.totalorder %v2122_v22, %v1931_v44  ;;  %v2673_v22 = vmov 6  }
 0x116   :  { %1629 = vset.pattern.permute.xlu1 %v2669_v53  ;;  %v64_v45 = vpop.permute.xlu1 %63 }
 0x117   :  { %629 = vperm.xlu1 %1629, %v1824_v20   ;;  %v612_v60 = vpop.permute.xlu0 %611  ;;  %v476_v20 = vadd.f32 %v1389_v56, %v364_v61  ;;  %vm94_vm4 = vcmp.eq.s32.totalorder %v64_v45, %v1931_v44  ;;  %v473_v45 = vadd.f32 %v1386_v40, %v361_v11  ;;  %v1417_v11 = vsel %vm648_vm12, 1.0, %v1676_v50 }
 0x118   :  { %vm650_vm2 = vcmp.eq.s32.totalorder %v612_v60, %v1931_v44  ;;  %v1343_v48 = vsel %vm94_vm4, 1.0, %v1676_v50  ;;  %vm873_vm4 = vcmp.eq.s32.totalorder %v2118_v21, %v1931_v44  ;;  %vm97_vm12 = vcmp.eq.s32.totalorder %v1914_v38, %v1931_v44 }
 0x119   :  { %v1419_v37 = vsel %vm650_vm2, 1.0, %v1676_v50  ;;  %v585_v61 = vadd.f32 %v1402_v41, %v473_v45  ;;  %vm871_vm2 = vcmp.eq.s32.totalorder %v2072_v47, %v1931_v44  ;;  %v1408_v47 = vsel %vm543_vm1, 1.0, %v1676_v50 }
 0x11a   :  { %v2190_v24 = vadd.f32 %v1419_v37, %v2112_v63  ;;  %v588_v63 = vadd.f32 %v1405_v28, %v476_v20  ;;  %v1392_v28 = vsel %vm431_vm14, 1.0, %v1676_v50  ;;  %v1447_v37 = vsel %vm870_vm0, 1.0, %v1676_v50 }
 0x11b   :  { %632 = vperm.xlu1 %1629, %v1761_v10   ;;  %v176_v29 = vpop.permute.xlu1 %175  ;;  %v618_v27 = vpop.permute.xlu0 %617  ;;  %v1448_v32 = vsel %vm871_vm2, 1.0, %v1676_v50  ;;  %v1434_v20 = vsel %vm761_vm3, 1.0, %v1676_v50  ;;  %v697_v40 = vadd.f32 %v1418_v15, %v585_v61  ;;  %v918_v21 = vadd.f32 %v1447_v37, %v806_v23 }
 0x11c   :  { %vm206_vm9 = vcmp.eq.s32.totalorder %v176_v29, %v1931_v44  ;;  %vm652_vm10 = vcmp.eq.s32.totalorder %v618_v27, %v1931_v44  ;;  %v1450_v16 = vsel %vm873_vm4, 1.0, %v1676_v50  ;;  %v1449_v45 = vsel %vm872_vm6, 1.0, %v1676_v50 }
 0x11d   :  { %v1359_v54 = vsel %vm206_vm9, 1.0, %v1676_v50  ;;  %v1421_v59 = vsel %vm652_vm10, 1.0, %v1676_v50  ;;  %v809_v13 = vadd.f32 %v1434_v20, %v697_v40  ;;  %v934_v49 = vmul.f32 0.125, %v918_v21 }
 0x11e   :  { %v2211_v6 = vadd.f32 %v1359_v54, %v1343_v48  ;;  %v2213_v7 = vadd.f32 %v1421_v59, %v588_v63  ;;  %v696_v59 = vadd.f32 %v1417_v11, %v2179_v30  ;;  %vm320_vm9 = vcmp.eq.s32.totalorder %v2020_v52, %v1931_v44 }
 0x11f   :  { %1631 = vset.pattern.permute.xlu1 %v2672_v9  ;;  %v179_v56 = vpop.permute.xlu1 %178  ;;  %v2226_v60 = vpop.permute.xlu0 %638  ;;  %v1377_v15 = vsel %vm320_vm9, 1.0, %v1676_v50  ;;  %v2674_v38 = vmov 3   ;;  %vm203_vm2 = vcmp.eq.s32.totalorder %v1963_v57, %v1931_v44  ;;  %vm91_vm3 = vcmp.eq.s32.totalorder %v1989_v2, %v1931_v44 }
 0x120   :  { %vm207_vm15 = vcmp.eq.s32.totalorder %v179_v56, %v1931_v44  ;;  %302 = vperm.xlu1 %1631, %v1801_v17   ;;  %v921_v56 = vadd.f32 %v1450_v16, %v809_v13  ;;  %vm315_vm4 = vcmp.eq.s32.totalorder %v2057_v3, %v1931_v44  ;;  %vm539_vm6 = vcmp.eq.s32.totalorder %v2128_v0, %v1931_v44 }
 0x121   :  { %v1360_v26 = vsel %vm207_vm15, 1.0, %v1676_v50  ;;  %v1372_v57 = vsel %vm315_vm4, 1.0, %v1676_v50 }
 0x122   :  { %v255_v58 = vadd.f32 %v1360_v26, %v1344_v1 }
 0x124   :  { %v367_v5 = vadd.f32 %v1376_v35, %v255_v58  ;;  %1632 = vset.pattern.permute.xlu1 %v2673_v22  ;;  %v2259_v1 = vpop.permute.xlu1 %614  ;;  %v715_v41 = vpop.permute.xlu0 %714  ;;  %v937_v58 = vmul.f32 0.125, %v921_v56 }
 0x125   :  { %vm759_vm5 = vcmp.eq.s32.totalorder %v715_v41, %v1931_v44  ;;  %735 = vperm.xlu1 %1632, %v1899_v33   ;;  %vm651_vm8 = vcmp.eq.s32.totalorder %v2259_v1, %v1931_v44  ;;  %v1664_v1 = vld [vmem:[%s2645_s0 + $0x60] sm:$0xff] }
 0x126   :  { %v1432_v29 = vsel %vm759_vm5, 1.0, %v1676_v50  ;;  %v479_v27 = vadd.f32 %v1392_v28, %v367_v5  ;;  %vm427_vm5 = vcmp.eq.s32.totalorder %v2084_v39, %v1931_v44 }
 0x127   :  { %v807_v63 = vadd.f32 %v1432_v29, %v695_v34  ;;  %v1393_v34 = vsel %vm432_vm13, 1.0, %v1676_v50  ;;  %v1388_v3 = vsel %vm427_vm5, 1.0, %v1676_v50  ;;  %vm98_vm5 = vcmp.eq.s32.totalorder %v1924_v42, %v1931_v44 }
 0x128   :  { %v718_v48 = vpop.permute.xlu0 %717  ;;  %v2272_v54 = vadd.f32 %v1408_v47, %v479_v27  ;;  %v1347_v42 = vsel %vm98_vm5, 1.0, %v1676_v50 }
 0x129   :  { %vm760_vm7 = vcmp.eq.s32.totalorder %v718_v48, %v1931_v44  ;;  %1633 = vset.pattern.permute.xlu1 %v2672_v9  ;;  %v70_v25 = vpop.permute.xlu1 %69  ;;  %v919_v35 = vadd.f32 %v1448_v32, %v807_v63 }
 0x12a   :  { %v1433_v14 = vsel %vm760_vm7, 1.0, %v1676_v50  ;;  %305 = vperm.xlu1 %1633, %v1775_v12   ;;  %vm96_vm10 = vcmp.eq.s32.totalorder %v70_v25, %v1931_v44 }
 0x12b   :  { %v808_v43 = vadd.f32 %v1433_v14, %v696_v59  ;;  %v935_v30 = vmul.f32 0.125, %v919_v35  ;;  %v1345_v23 = vsel %vm96_vm10, 1.0, %v1676_v50  ;;  %v1404_v14 = vsel %vm539_vm6, 1.0, %v1676_v50 }
 0x12c   :  { %v730_v51 = vpop.permute.xlu0 %729  ;;  %vm322_vm6 = vcmp.eq.s32.totalorder %v2030_v55, %v1931_v44 }
 0x12d   :  { %v920_v9 = vadd.f32 %v1449_v45, %v808_v43  ;;  %vm764_vm11 = vcmp.eq.s32.totalorder %v730_v51, %v1931_v44  ;;  %v950_v26 = vpack.c.bf16 %v935_v30, %v934_v49  ;;  %v1379_v55 = vsel %vm322_vm6, 1.0, %v1676_v50 }
 0x12e   :  { %v1437_v11 = vsel %vm764_vm11, 1.0, %v1676_v50  ;;  %308 = vperm.xlu1 %1633, %v1808_v18   ;;  %v182_v46 = vpop.permute.xlu1 %181 }
 0x12f   :  { %v936_v61 = vmul.f32 0.125, %v920_v9  ;;  %v812_v28 = vadd.f32 %v1437_v11, %v2213_v7  ;;  %vm208_vm14 = vcmp.eq.s32.totalorder %v182_v46, %v1931_v44  ;;  %1528 = vmatprep.mubr.bf16.mxu0 %v950_v26  ;;  %v1346_v7 = vsel %vm97_vm12, 1.0, %v1676_v50 }
 0x130   :  { %v1361_v37 = vsel %vm208_vm14, 1.0, %v1676_v50 }
 0x131   :  { %v2301_v5 = vadd.f32 %v1453_v36, %v812_v28  ;;  %v256_v41 = vadd.f32 %v1361_v37, %v1345_v23  ;;  %v951_v47 = vpack.c.bf16 %v937_v58, %v936_v61  ;;  %v1665_v36 = vld [vmem:[%s2645_s0 + $0x70] sm:$0xff] }
 0x132   :  { %1634 = vset.pattern.permute.xlu1 %v2673_v22  ;;  %v185_v52 = vpop.permute.xlu1 %184 }
 0x133   :  { %v368_v32 = vadd.f32 %v1377_v15, %v256_v41  ;;  %vm209_vm15 = vcmp.eq.s32.totalorder %v185_v52, %v1931_v44  ;;  %744 = vperm.xlu1 %1634, %v1761_v10   ;;  %1529 = vmatmul.mubr.bf16.vlgmr.msra.gmra.mrb[0].mxu0 %v951_v47 }
 0x134   :  { %v1362_v20 = vsel %vm209_vm15, 1.0, %v1676_v50 }
 0x135   :  { %v257_v29 = vadd.f32 %v1362_v20, %v1346_v7  ;;  %v2315_v27 = vadd.f32 %v1393_v34, %v368_v32  ;;  %v1667_v20 = vld [vmem:[%s2645_s0 + $0x68] sm:$0xff] }
 0x137   :  { %1636 = vset.pattern.permute.xlu1 %v2674_v38  ;;  %v2318_v40 = vpop.permute.xlu1 %620 }
 0x138   :  { %414 = vperm.xlu1 %1636, %v1801_v17   ;;  %vm653_vm13 = vcmp.eq.s32.totalorder %v2318_v40, %v1931_v44 }
 0x139   :  { %v1422_v41 = vsel %vm653_vm13, 1.0, %v1676_v50 }
 0x13a   :  { %v701_v32 = vadd.f32 %v1422_v41, %v2120_v19  ;;  %v1656_v19 = vld [vmem:[%s2647_s3] sm:$0xff]  }
 0x13b   :  { %1544 = vmatprep.subr.bf16.mxu1 %v1656_v19 }
 0x13c   :  { %1637 = vset.pattern.permute.xlu1 %v2675_v4  ;;  %v288_v63 = vpop.permute.xlu1 %287  ;;  %1545 = vmatpush3.bf16.msra.mxu1 %v1656_v19 }
 0x13d   :  { %vm318_vm0 = vcmp.eq.s32.totalorder %v288_v63, %v1931_v44  ;;  %847 = vperm.xlu1 %1637, %v1899_v33  }
 0x13e   :  { %v1375_v21 = vsel %vm318_vm0, 1.0, %v1676_v50 }
 0x13f   :  { %v366_v16 = vadd.f32 %v1375_v21, %v2211_v6  ;;  %v2676_v6 = vmov 4   ;;  %v940_v21 = vmul.f32 0.125, %v2301_v5  ;;  %v1657_v5 = vld [vmem:[%s2647_s3 + $0x8] sm:$0xff]  }
 0x140   :  { %1546 = vmatprep.subr.bf16.mxu1 %v1657_v5 }
 0x141   :  { %1638 = vset.pattern.permute.xlu1 %v2674_v38  ;;  %v724_v48 = vpop.permute.xlu1 %723  ;;  %1547 = vmatpush3.bf16.msra.mxu1 %v1657_v5 }
 0x142   :  { %417 = vperm.xlu1 %1638, %v1775_v12   ;;  %vm762_vm9 = vcmp.eq.s32.totalorder %v724_v48, %v1931_v44 }
 0x143   :  { %v1435_v43 = vsel %vm762_vm9, 1.0, %v1676_v50  ;;  %vm546_vm9 = vcmp.eq.s32.totalorder %v2134_v8, %v1931_v44 }
 0x145   :  { %v727_v59 = vpop.permute.xlu1 %726 }
 0x146   :  { %420 = vperm.xlu1 %1638, %v1808_v18   ;;  %v1356_v18 = vsel %vm203_vm2, 1.0, %v1676_v50  ;;  %vm763_vm10 = vcmp.eq.s32.totalorder %v727_v59, %v1931_v44 }
 0x147   :  { %v1436_v51 = vsel %vm763_vm10, 1.0, %v1676_v50 }
 0x14a   :  { %1640 = vset.pattern.permute.xlu1 %v2675_v4  ;;  %v297_v13 = vpop.permute.xlu1 %296 }
 0x14b   :  { %vm321_vm1 = vcmp.eq.s32.totalorder %v297_v13, %v1931_v44  ;;  %856 = vperm.xlu1 %1640, %v1761_v10   ;;  %v1340_v10 = vsel %vm91_vm3, 1.0, %v1676_v50  ;;  %vm211_vm3 = vcmp.eq.s32.totalorder %v1978_v62, %v1931_v44  ;;  %v1660_v62 = vld [vmem:[%s2647_s3 + $0x20] sm:$0xff]  }
 0x14c   :  { %v1378_v33 = vsel %vm321_vm1, 1.0, %v1676_v50  ;;  %v251_v45 = vadd.f32 %v1356_v18, %v1340_v10  ;;  %v1659_v18 = vld [vmem:[%s2647_s3 + $0x18] sm:$0xff]   ;;  %v1364_v10 = vsel %vm211_vm3, 1.0, %v1676_v50 }
 0x14d   :  { %v369_v25 = vadd.f32 %v1378_v33, %v257_v29 }
 0x14f   :  { %1641 = vset.pattern.permute.xlu1 %v2676_v6  ;;  %v733_v35 = vpop.permute.xlu1 %732 }
 0x150   :  { %526 = vperm.xlu1 %1641, %v1801_v17   ;;  %v363_v17 = vadd.f32 %v1372_v57, %v251_v45  ;;  %vm765_vm14 = vcmp.eq.s32.totalorder %v733_v35, %v1931_v44 }
 0x151   :  { %v1438_v34 = vsel %vm765_vm14, 1.0, %v1676_v50 }
 0x152   :  { %v475_v0 = vadd.f32 %v1388_v3, %v363_v17  ;;  %v813_v38 = vadd.f32 %v1438_v34, %v701_v32  ;;  %v2677_v3 = vld [vmem:[#allocation4_spill] sm:$0xff]  ;;  %v1661_v17 = vld [vmem:[%s2647_s3 + $0x28] sm:$0xff]  }
 0x154   :  { %529 = vperm.xlu1 %1641, %v1775_v12   ;;  %v400_v2 = vpop.permute.xlu1 %399  ;;  %v1420_v12 = vsel %vm651_vm8, 1.0, %v1676_v50  ;;  %v587_v30 = vadd.f32 %v1404_v14, %v475_v0 }
 0x155   :  { %vm430_vm7 = vcmp.eq.s32.totalorder %v400_v2, %v1931_v44 }
 0x156   :  { %v1391_v39 = vsel %vm430_vm7, 1.0, %v1676_v50  ;;  %v699_v26 = vadd.f32 %v1420_v12, %v587_v30  ;;  %vm434_vm7 = vcmp.eq.s32.totalorder %v2677_v3, %v1931_v44 }
 0x157   :  { %v2356_v56 = vadd.f32 %v1391_v39, %v366_v16  ;;  %v1395_v0 = vsel %vm434_vm7, 1.0, %v1676_v50 }
 0x158   :  { %1643 = vset.pattern.permute.xlu1 %v2669_v53  ;;  %v810_v53 = vadd.f32 %v1435_v43, %v2190_v24  ;;  %v811_v46 = vadd.f32 %v1436_v51, %v699_v26  ;;  %v1666_v24 = vld [vmem:[%s2645_s0 + $0x78] sm:$0xff]  ;;  %v1662_v51 = vld [vmem:[%s2647_s3 + $0x30] sm:$0xff]  }
 0x159   :  { %635 = vperm.xlu1 %1643, %v1664_v1   ;;  %v836_v49 = vpop.permute.xlu1 %835  ;;  %v2678_v26 = vld [vmem:[#allocation5_spill] sm:$0xff] }
 0x15a   :  { %vm874_vm11 = vcmp.eq.s32.totalorder %v836_v49, %v1931_v44  ;;  %v1411_v49 = vsel %vm546_vm9, 1.0, %v1676_v50 }
 0x15b   :  { %v1451_v9 = vsel %vm874_vm11, 1.0, %v1676_v50  ;;  %vm879_vm11 = vcmp.eq.s32.totalorder %v2678_v26, %v1931_v44 }
 0x15c   :  { %v922_v58 = vadd.f32 %v1451_v9, %v810_v53 }
 0x15d   :  { %641 = vperm.xlu1 %1643, %v1665_v36   ;;  %v839_v11 = vpop.permute.xlu1 %838 }
 0x15e   :  { %vm875_vm12 = vcmp.eq.s32.totalorder %v839_v11, %v1931_v44  ;;  %v938_v15 = vmul.f32 0.125, %v922_v58  ;;  %v1663_v11 = vld [vmem:[%s2647_s3 + $0x38] sm:$0xff]   ;;  %v2679_v58 = vld [vmem:[#allocation3_spill] sm:$0xff] }
 0x15f   :  { %v1452_v61 = vsel %vm875_vm12, 1.0, %v1676_v50  ;;  %vm213_vm13 = vcmp.eq.s32.totalorder %v2679_v58, %v1931_v44 }
 0x160   :  { %v923_v28 = vadd.f32 %v1452_v61, %v811_v46  ;;  %v1456_v61 = vsel %vm879_vm11, 1.0, %v1676_v50 }
 0x161   :  { %644 = vperm.xlu1 %1643, %v1666_v24  }
 0x162   :  { %v939_v23 = vmul.f32 0.125, %v923_v28  ;;  %v409_v37 = vpop.permute.xlu1 %408 }
 0x163   :  { %vm433_vm15 = vcmp.eq.s32.totalorder %v409_v37, %v1931_v44 }
 0x164   :  { %v1394_v47 = vsel %vm433_vm15, 1.0, %v1676_v50  ;;  %v952_v7 = vpack.c.bf16 %v939_v23, %v938_v15  ;;  %v1366_v15 = vsel %vm213_vm13, 1.0, %v1676_v50  ;;  %vm549_vm13 = vcmp.eq.s32.totalorder %v2154_v31, %v1931_v44 }
 0x165   :  { %v481_v52 = vadd.f32 %v1394_v47, %v369_v25  ;;  %1645 = vset.pattern.permute.xlu1 %v2673_v22  ;;  %v1658_v25 = vld [vmem:[%s2647_s3 + $0x10] sm:$0xff]   ;;  %v2680_v47 = vld [vmem:[#allocation2_spill] sm:$0xff]  ;;  %v1414_v26 = vsel %vm549_vm13, 1.0, %v1676_v50 }
 0x166   :  { %750 = vperm.xlu1 %1645, %v1667_v20   ;;  %1532 = vmatprep.mubr.bf16.mxu0 %v952_v7  ;;  %vm100_vm15 = vcmp.eq.s32.totalorder %v2680_v47, %v1931_v44 }
 0x167   :  { %v845_v29 = vpop.permute.xlu1 %844  ;;  %1548 = vmatprep.subr.bf16.mxu1 %v1658_v25  ;;  %v1349_v34 = vsel %vm100_vm15, 1.0, %v1676_v50 }
 0x168   :  { %vm877_vm0 = vcmp.eq.s32.totalorder %v845_v29, %v1931_v44  ;;  %1549 = vmatpush3.bf16.msra.mxu1 %v1658_v25  ;;  %v2681_v29 = vld [vmem:[#allocation6_spill] sm:$0xff] }
 0x169   :  { %v1454_v40 = vsel %vm877_vm0, 1.0, %v1676_v50  ;;  %1550 = vmatprep.subr.bf16.mxu1 %v1659_v18 }
 0x16a   :  { %v925_v63 = vadd.f32 %v1454_v40, %v813_v38  ;;  %753 = vperm.xlu1 %1645, %v1665_v36  }
 0x16c   :  { %v941_v16 = vmul.f32 0.125, %v925_v63  ;;  %v2392_v22 = vpop.permute.xlu1 %511  ;;  %1551 = vmatpush3.bf16.msra.mxu1 %v1659_v18 }
 0x16d   :  { %1552 = vmatprep.subr.bf16.mxu1 %v1660_v62  ;;  %vm542_vm6 = vcmp.eq.s32.totalorder %v2392_v22, %v1931_v44 }
 0x16e   :  { %1646 = vset.pattern.permute.xlu1 %v2675_v4  ;;  %v953_v48 = vpack.c.bf16 %v941_v16, %v940_v21 }
 0x16f   :  { %859 = vperm.xlu1 %1646, %v1664_v1   ;;  %v739_v1 = vpop.permute.xlu0 %738 }
 0x170   :  { %v518_v59 = vpop.permute.xlu1 %517  ;;  %1533 = vmatmul.mubr.bf16.gmra.mrb[4].mxu0 %v953_v48  ;;  %1553 = vmatpush3.bf16.msra.mxu1 %v1660_v62  ;;  %vm767_vm10 = vcmp.eq.s32.totalorder %v739_v1, %v1931_v44 }
 0x171   :  { %vm544_vm1 = vcmp.eq.s32.totalorder %v518_v59, %v1931_v44  ;;  %1554 = vmatprep.subr.bf16.mxu1 %v1661_v17 }
 0x172   :  { %v1409_v13 = vsel %vm544_vm1, 1.0, %v1676_v50 }
 0x173   :  { %v2404_v33 = vadd.f32 %v1409_v13, %v2315_v27  ;;  %865 = vperm.xlu1 %1646, %v1665_v36   ;;  %v1440_v36 = vsel %vm767_vm10, 1.0, %v1676_v50  ;;  %v742_v7 = vpop.permute.xlu0 %741 }
 0x174   :  { %v521_v4 = vpop.permute.xlu1 %520  ;;  %1555 = vmatpush3.bf16.msra.mxu1 %v1661_v17  ;;  %vm768_vm1 = vcmp.eq.s32.totalorder %v742_v7, %v1931_v44 }
 0x175   :  { %vm545_vm2 = vcmp.eq.s32.totalorder %v521_v4, %v1931_v44  ;;  %1556 = vmatprep.subr.bf16.mxu1 %v1662_v51  ;;  %v1441_v40 = vsel %vm768_vm1, 1.0, %v1676_v50  ;;  %vm659_vm1 = vcmp.eq.s32.totalorder %v2226_v60, %v1931_v44 }
 0x176   :  { %v1410_v6 = vsel %vm545_vm2, 1.0, %v1676_v50  ;;  %vm880_vm2 = vcmp.eq.s32.totalorder %v2681_v29, %v1931_v44  ;;  %v1428_v47 = vsel %vm659_vm1, 1.0, %v1676_v50 }
 0x177   :  { %v2411_v35 = vadd.f32 %v1410_v6, %v481_v52  ;;  %868 = vperm.xlu1 %1646, %v1666_v24   ;;  %v1457_v21 = vsel %vm880_vm2, 1.0, %v1676_v50 }
 0x178   :  { %1557 = vmatpush3.bf16.msra.mxu1 %v1662_v51 }
 0x179   :  { %v79_v27 = vpop.permute.xlu1 %78  ;;  %1558 = vmatprep.subr.bf16.mxu1 %v1663_v11 }
 0x17a   :  { %vm99_vm4 = vcmp.eq.s32.totalorder %v79_v27, %v1931_v44 }
 0x17b   :  { %v1348_v57 = vsel %vm99_vm4, 1.0, %v1676_v50 }
 0x17c   :  { %v2421_v45 = vadd.f32 %v1364_v10, %v1348_v57  ;;  %1559 = vmatpush3.bf16.msra.mxu1 %v1663_v11  ;;  %v1407_v10 = vsel %vm542_vm6, 1.0, %v1676_v50 }
 0x17d   :  { %v590_v62 = vadd.f32 %v1407_v10, %v2356_v56 }
 0x17e   :  { %v188_v2 = vpop.permute.xlu1 %187 }
 0x17f   :  { %vm210_vm8 = vcmp.eq.s32.totalorder %v188_v2, %v1931_v44 }
 0x180   :  { %v1363_v39 = vsel %vm210_vm8, 1.0, %v1676_v50 }
 0x181   :  { %v258_v14 = vadd.f32 %v1363_v39, %v1347_v42 }
 0x183   :  { %v370_v12 = vadd.f32 %v1379_v55, %v258_v14  ;;  %v2442_v43 = vpop.permute.xlu1 %623 }
 0x184   :  { %vm654_vm7 = vcmp.eq.s32.totalorder %v2442_v43, %v1931_v44 }
 0x185   :  { %v482_v30 = vadd.f32 %v1395_v0, %v370_v12 }
 0x187   :  { %v627_v8 = vpop.permute.xlu1 %626  ;;  %v2449_v9 = vadd.f32 %v1411_v49, %v482_v30 }
 0x188   :  { %vm655_vm12 = vcmp.eq.s32.totalorder %v627_v8, %v1931_v44 }
 0x189   :  { %v1424_v53 = vsel %vm655_vm12, 1.0, %v1676_v50 }
 0x18a   :  { %v703_v46 = vadd.f32 %v1424_v53, %v2272_v54 }
 0x18c   :  { %v815_v28 = vadd.f32 %v1440_v36, %v703_v46  ;;  %v85_v24 = vpop.permute.xlu1 %84 }
 0x18d   :  { %vm101_vm14 = vcmp.eq.s32.totalorder %v85_v24, %v1931_v44 }
 0x18e   :  { %v927_v23 = vadd.f32 %v1456_v61, %v815_v28  ;;  %v1350_v37 = vsel %vm101_vm14, 1.0, %v1676_v50 }
 0x18f   :  { %v261_v41 = vadd.f32 %v1366_v15, %v1350_v37 }
 0x190   :  { %v943_v14 = vmul.f32 0.125, %v927_v23 }
 0x191   :  { %v194_v54 = vpop.permute.xlu1 %193 }
 0x192   :  { %vm212_vm0 = vcmp.eq.s32.totalorder %v194_v54, %v1931_v44 }
 0x193   :  { %v1365_v52 = vsel %vm212_vm0, 1.0, %v1676_v50 }
 0x194   :  { %v260_v32 = vadd.f32 %v1365_v52, %v1349_v34  ;;  %v748_v52 = vpop.permute.xlu0 %747 }
 0x196   :  { %v630_v20 = vpop.permute.xlu1 %629 }
 0x197   :  { %vm656_vm3 = vcmp.eq.s32.totalorder %v630_v20, %v1931_v44 }
 0x198   :  { %v1425_v38 = vsel %vm656_vm3, 1.0, %v1676_v50  ;;  %v757_v29 = vpop.permute.xlu0 %756 }
 0x199   :  { %v704_v63 = vadd.f32 %v1425_v38, %v2404_v33  ;;  %vm773_vm13 = vcmp.eq.s32.totalorder %v757_v29, %v1931_v44 }
 0x19a   :  { %v633_v16 = vpop.permute.xlu1 %632 }
 0x19b   :  { %v816_v19 = vadd.f32 %v1441_v40, %v704_v63  ;;  %vm657_vm11 = vcmp.eq.s32.totalorder %v633_v16, %v1931_v44 }
 0x19c   :  { %v1426_v1 = vsel %vm657_vm11, 1.0, %v1676_v50  ;;  %v863_v38 = vpop.permute.xlu0 %862 }
 0x19d   :  { %v928_v48 = vadd.f32 %v1457_v21, %v816_v19  ;;  %v705_v53 = vadd.f32 %v1426_v1, %v2411_v35  ;;  %vm883_vm6 = vcmp.eq.s32.totalorder %v863_v38, %v1931_v44 }
 0x19f   :  { %v303_v59 = vpop.permute.xlu1 %302  ;;  %v944_v28 = vmul.f32 0.125, %v928_v48 }
 0x1a0   :  { %vm323_vm4 = vcmp.eq.s32.totalorder %v303_v59, %v1931_v44  ;;  %v1460_v59 = vsel %vm883_vm6, 1.0, %v1676_v50 }
 0x1a1   :  { %v1380_v5 = vsel %vm323_vm4, 1.0, %v1676_v50 }
 0x1a2   :  { %v371_v13 = vadd.f32 %v1380_v5, %v2421_v45  ;;  %v1423_v45 = vsel %vm654_vm7, 1.0, %v1676_v50 }
 0x1a3   :  { %v702_v3 = vadd.f32 %v1423_v45, %v590_v62 }
 0x1a4   :  { %v736_v4 = vpop.permute.xlu1 %735 }
 0x1a5   :  { %vm766_vm8 = vcmp.eq.s32.totalorder %v736_v4, %v1931_v44 }
 0x1a6   :  { %v1439_v2 = vsel %vm766_vm8, 1.0, %v1676_v50  ;;  %vm770_vm8 = vcmp.eq.s32.totalorder %v748_v52, %v1931_v44 }
 0x1a7   :  { %v814_v42 = vadd.f32 %v1439_v2, %v702_v3 }
 0x1a9   :  { %v306_v25 = vpop.permute.xlu1 %305 }
 0x1aa   :  { %vm324_vm5 = vcmp.eq.s32.totalorder %v306_v25, %v1931_v44 }
 0x1ab   :  { %v1381_v6 = vsel %vm324_vm5, 1.0, %v1676_v50 }
 0x1ac   :  { %v2484_v27 = vadd.f32 %v1381_v6, %v260_v32 }
 0x1ad   :  { %v309_v33 = vpop.permute.xlu1 %308 }
 0x1ae   :  { %vm325_vm10 = vcmp.eq.s32.totalorder %v309_v33, %v1931_v44 }
 0x1af   :  { %v1382_v12 = vsel %vm325_vm10, 1.0, %v1676_v50 }
 0x1b0   :  { %v373_v49 = vadd.f32 %v1382_v12, %v261_v41 }
 0x1b2   :  { %v745_v18 = vpop.permute.xlu1 %744 }
 0x1b3   :  { %vm769_vm12 = vcmp.eq.s32.totalorder %v745_v18, %v1931_v44 }
 0x1b4   :  { %v1442_v51 = vsel %vm769_vm12, 1.0, %v1676_v50 }
 0x1b5   :  { %v817_v46 = vadd.f32 %v1442_v51, %v705_v53 }
 0x1b7   :  { %v415_v57 = vpop.permute.xlu1 %414 }
 0x1b8   :  { %vm435_vm15 = vcmp.eq.s32.totalorder %v415_v57, %v1931_v44 }
 0x1b9   :  { %v1396_v58 = vsel %vm435_vm15, 1.0, %v1676_v50 }
 0x1ba   :  { %v483_v23 = vadd.f32 %v1396_v58, %v371_v13  ;;  %v1443_v13 = vsel %vm770_vm8, 1.0, %v1676_v50 }
 0x1bc   :  { %v848_v17 = vpop.permute.xlu1 %847 }
 0x1bd   :  { %vm878_vm9 = vcmp.eq.s32.totalorder %v848_v17, %v1931_v44 }
 0x1be   :  { %v1455_v22 = vsel %vm878_vm9, 1.0, %v1676_v50 }
 0x1bf   :  { %v926_v39 = vadd.f32 %v1455_v22, %v814_v42 }
 0x1c1   :  { %v942_v55 = vmul.f32 0.125, %v926_v39  ;;  %v418_v0 = vpop.permute.xlu1 %417 }
 0x1c2   :  { %vm436_vm5 = vcmp.eq.s32.totalorder %v418_v0, %v1931_v44 }
 0x1c3   :  { %v954_v56 = vpack.c.bf16 %v943_v14, %v942_v55  ;;  %v1397_v19 = vsel %vm436_vm5, 1.0, %v1676_v50  ;;  %v1446_v55 = vsel %vm773_vm13, 1.0, %v1676_v50 }
 0x1c4   :  { %v484_v4 = vadd.f32 %v1397_v19, %v2484_v27 }
 0x1c5   :  { %v421_v43 = vpop.permute.xlu1 %420  ;;  %1536 = vmatprep.mubr.bf16.mxu0 %v954_v56 }
 0x1c6   :  { %vm437_vm14 = vcmp.eq.s32.totalorder %v421_v43, %v1931_v44 }
 0x1c7   :  { %v1398_v30 = vsel %vm437_vm14, 1.0, %v1676_v50 }
 0x1c8   :  { %v485_v8 = vadd.f32 %v1398_v30, %v373_v49 }
 0x1ca   :  { %v857_v36 = vpop.permute.xlu1 %856  ;;  %v597_v11 = vadd.f32 %v1414_v26, %v485_v8  ;;  %v1463_v8 = vld [vmem:[%s2648_s2] ss:$0 sm:$0xff] }
 0x1cb   :  { %vm881_vm0 = vcmp.eq.s32.totalorder %v857_v36, %v1931_v44 }
 0x1cc   :  { %v1458_v31 = vsel %vm881_vm0, 1.0, %v1676_v50 }
 0x1cd   :  { %v929_v61 = vadd.f32 %v1458_v31, %v817_v46 }
 0x1cf   :  { %v945_v24 = vmul.f32 0.125, %v929_v61  ;;  %v527_v15 = vpop.permute.xlu1 %526 }
 0x1d0   :  { %vm547_vm2 = vcmp.eq.s32.totalorder %v527_v15, %v1931_v44 }
 0x1d1   :  { %v1412_v35 = vsel %vm547_vm2, 1.0, %v1676_v50  ;;  %v955_v37 = vpack.c.bf16 %v945_v24, %v944_v28 }
 0x1d2   :  { %v595_v41 = vadd.f32 %v1412_v35, %v483_v23 }
 0x1d3   :  { %v530_v54 = vpop.permute.xlu1 %529  ;;  %1537 = vmatmul.mubr.bf16.gmra.mrb[8].mxu0 %v955_v37 }
 0x1d4   :  { %v707_v7 = vadd.f32 %v1428_v47, %v595_v41  ;;  %vm548_vm7 = vcmp.eq.s32.totalorder %v530_v54, %v1931_v44 }
 0x1d5   :  { %v1413_v5 = vsel %vm548_vm7, 1.0, %v1676_v50 }
 0x1d6   :  { %v596_v18 = vadd.f32 %v1413_v5, %v484_v4 }
 0x1d8   :  { %v636_v34 = vpop.permute.xlu1 %635 }
 0x1d9   :  { %vm658_vm3 = vcmp.eq.s32.totalorder %v636_v34, %v1931_v44 }
 0x1da   :  { %v1427_v40 = vsel %vm658_vm3, 1.0, %v1676_v50 }
 0x1db   :  { %v706_v16 = vadd.f32 %v1427_v40, %v2449_v9 }
 0x1dc   :  { %v642_v32 = vpop.permute.xlu1 %641 }
 0x1dd   :  { %vm660_vm9 = vcmp.eq.s32.totalorder %v642_v32, %v1931_v44  ;;  %v818_v6 = vadd.f32 %v1443_v13, %v706_v16 }
 0x1de   :  { %v1429_v33 = vsel %vm660_vm9, 1.0, %v1676_v50 }
 0x1df   :  { %v708_v62 = vadd.f32 %v1429_v33, %v596_v18 }
 0x1e0   :  { %v645_v20 = vpop.permute.xlu1 %644 }
 0x1e1   :  { %vm661_vm10 = vcmp.eq.s32.totalorder %v645_v20, %v1931_v44 }
 0x1e2   :  { %v1430_v10 = vsel %vm661_vm10, 1.0, %v1676_v50 }
 0x1e3   :  { %v709_v3 = vadd.f32 %v1430_v10, %v597_v11 }
 0x1e5   :  { %v751_v60 = vpop.permute.xlu1 %750  ;;  %v821_v56 = vadd.f32 %v1446_v55, %v709_v3 }
 0x1e6   :  { %vm771_vm4 = vcmp.eq.s32.totalorder %v751_v60, %v1931_v44 }
 0x1e7   :  { %v1444_v63 = vsel %vm771_vm4, 1.0, %v1676_v50 }
 0x1e8   :  { %v819_v48 = vadd.f32 %v1444_v63, %v707_v7 }
 0x1e9   :  { %v754_v21 = vpop.permute.xlu1 %753 }
 0x1ea   :  { %v931_v9 = vadd.f32 %v1460_v59, %v819_v48  ;;  %vm772_vm11 = vcmp.eq.s32.totalorder %v754_v21, %v1931_v44 }
 0x1eb   :  { %v1445_v27 = vsel %vm772_vm11, 1.0, %v1676_v50 }
 0x1ec   :  { %v947_v17 = vmul.f32 0.125, %v931_v9  ;;  %v820_v39 = vadd.f32 %v1445_v27, %v708_v62 }
 0x1ee   :  { %v860_v25 = vpop.permute.xlu1 %859 }
 0x1ef   :  { %vm882_vm12 = vcmp.eq.s32.totalorder %v860_v25, %v1931_v44 }
 0x1f0   :  { %v1459_v57 = vsel %vm882_vm12, 1.0, %v1676_v50 }
 0x1f1   :  { %v930_v45 = vadd.f32 %v1459_v57, %v818_v6 }
 0x1f2   :  { %v866_v2 = vpop.permute.xlu1 %865 }
 0x1f3   :  { %v946_v42 = vmul.f32 0.125, %v930_v45  ;;  %vm884_vm14 = vcmp.eq.s32.totalorder %v866_v2, %v1931_v44 }
 0x1f4   :  { %v1461_v22 = vsel %vm884_vm14, 1.0, %v1676_v50 }
 0x1f5   :  { %v956_v14 = vpack.c.bf16 %v947_v17, %v946_v42  ;;  %v932_v12 = vadd.f32 %v1461_v22, %v820_v39 }
 0x1f6   :  { %v869_v0 = vpop.permute.xlu1 %868 }
 0x1f7   :  { %vm885_vm15 = vcmp.eq.s32.totalorder %v869_v0, %v1931_v44  ;;  %1540 = vmatprep.mubr.bf16.mxu0 %v956_v14  ;;  %v948_v49 = vmul.f32 0.125, %v932_v12 }
 0x1f8   :  { %v1462_v43 = vsel %vm885_vm15, 1.0, %v1676_v50 }
 0x1f9   :  { %v933_v1 = vadd.f32 %v1462_v43, %v821_v56 }
 0x1fb   :  { %v949_v30 = vmul.f32 0.125, %v933_v1 }
 0x1fd   :  { %v957_v51 = vpack.c.bf16 %v949_v30, %v948_v49 }
 0x1ff   :  { %1541 = vmatmul.mubr.bf16.gmra.mrb[12].mxu0 %v957_v51 }
 0x206   :  { %v1530_v26 = vpop.f32.mrb[0].mxu0 }
 0x207   :  { %v1072_v53 = vadd.f32 %v1530_v26, %v1463_v8  ;;  %v1063_v36 = vpop.f32.mrb[1].mxu0 }
 0x208   :  { %v1064_v11 = vadd.f32 %v1463_v8, %v1063_v36  ;;  %v1531_v46 = vpop.f32.mrb[2].mxu0 }
 0x209   :  { %1128 = vst [vmem:[%s2649_s4 + $0x10] sm:$0xff] %v1072_v53  ;;  %v1075_v44 = vadd.f32 %v1531_v46, %v1463_v8  ;;  %v1066_v50 = vpop.f32.mrb[3].mxu0 }
 0x20a   :  { %1126 = vst [vmem:[%s2649_s4] sm:$0xff] %v1064_v11  ;;  %v1067_v31 = vadd.f32 %v1463_v8, %v1066_v50 }
 0x20b   :  { %1129 = vst [vmem:[%s2649_s4 + $0x18] sm:$0xff] %v1075_v44  ;;  %v1143_v58 = vpack.c.bf16 %v1075_v44, %v1072_v53 }
 0x20c   :  { %1127 = vst [vmem:[%s2649_s4 + $0x8] sm:$0xff] %v1067_v31  ;;  %v1142_v61 = vpack.c.bf16 %v1067_v31, %v1064_v11 }
 0x20e   :  { %1560 = vmatprep.mubr.bf16.mxu1 %v1142_v61 }
 0x20f   :  { %1561 = vmatmul.mubr.bf16.vlgmr.msra.gmra.mrb[0].mxu1 %v1143_v58 }
 0x243   :  { %v1534_v28 = vpop.f32.mrb[4].mxu0 }
 0x244   :  { %v1088_v24 = vadd.f32 %v1534_v28, %v1463_v8  ;;  %v1079_v15 = vpop.f32.mrb[5].mxu0 }
 0x245   :  { %v1080_v23 = vadd.f32 %v1463_v8, %v1079_v15  ;;  %v1535_v35 = vpop.f32.mrb[6].mxu0 }
 0x246   :  { %1132 = vst [vmem:[%s2649_s4 + $0x30] sm:$0xff] %v1088_v24  ;;  %v1091_v37 = vadd.f32 %v1535_v35, %v1463_v8  ;;  %v1082_v41 = vpop.f32.mrb[7].mxu0 }
 0x247   :  { %1130 = vst [vmem:[%s2649_s4 + $0x20] sm:$0xff] %v1080_v23  ;;  %v1083_v47 = vadd.f32 %v1463_v8, %v1082_v41 }
 0x248   :  { %1133 = vst [vmem:[%s2649_s4 + $0x38] sm:$0xff] %v1091_v37  ;;  %v1145_v54 = vpack.c.bf16 %v1091_v37, %v1088_v24 }
 0x249   :  { %1131 = vst [vmem:[%s2649_s4 + $0x28] sm:$0xff] %v1083_v47  ;;  %v1144_v7 = vpack.c.bf16 %v1083_v47, %v1080_v23 }
 0x24b   :  { %1564 = vmatprep.mubr.bf16.mxu1 %v1144_v7 }
 0x24c   :  { %1565 = vmatmul.mubr.bf16.gmra.mrb[4].mxu1 %v1145_v54 }
 0x2a6   :  { %v1538_v34 = vpop.f32.mrb[8].mxu0 }
 0x2a7   :  { %v1104_v52 = vadd.f32 %v1538_v34, %v1463_v8  ;;  %v1095_v32 = vpop.f32.mrb[9].mxu0 }
 0x2a8   :  { %v1096_v20 = vadd.f32 %v1463_v8, %v1095_v32  ;;  %v1539_v29 = vpop.f32.mrb[10].mxu0 }
 0x2a9   :  { %1136 = vst [vmem:[%s2649_s4 + $0x50] sm:$0xff] %v1104_v52  ;;  %v1107_v60 = vadd.f32 %v1539_v29, %v1463_v8  ;;  %v1098_v38 = vpop.f32.mrb[11].mxu0 }
 0x2aa   :  { %1134 = vst [vmem:[%s2649_s4 + $0x40] sm:$0xff] %v1096_v20  ;;  %v1099_v40 = vadd.f32 %v1463_v8, %v1098_v38 }
 0x2ab   :  { %1137 = vst [vmem:[%s2649_s4 + $0x58] sm:$0xff] %v1107_v60  ;;  %v1147_v63 = vpack.c.bf16 %v1107_v60, %v1104_v52 }
 0x2ac   :  { %1135 = vst [vmem:[%s2649_s4 + $0x48] sm:$0xff] %v1099_v40  ;;  %v1146_v21 = vpack.c.bf16 %v1099_v40, %v1096_v20 }
 0x2ae   :  { %1568 = vmatprep.mubr.bf16.mxu1 %v1146_v21 }
 0x2af   :  { %1569 = vmatmul.mubr.bf16.gmra.mrb[8].mxu1 %v1147_v63 }
 0x2d2   :  { %v1542_v16 = vpop.f32.mrb[12].mxu0 }
 0x2d3   :  { %v1120_v19 = vadd.f32 %v1542_v16, %v1463_v8  ;;  %v1111_v48 = vpop.f32.mrb[13].mxu0 }
 0x2d4   :  { %v1112_v59 = vadd.f32 %v1463_v8, %v1111_v48  ;;  %v1543_v5 = vpop.f32.mrb[14].mxu0 }
 0x2d5   :  { %1140 = vst [vmem:[%s2649_s4 + $0x70] sm:$0xff] %v1120_v19  ;;  %v1123_v13 = vadd.f32 %v1543_v5, %v1463_v8  ;;  %v1114_v4 = vpop.f32.mrb[15].mxu0 }
 0x2d6   :  { %1138 = vst [vmem:[%s2649_s4 + $0x60] sm:$0xff] %v1112_v59  ;;  %v1115_v25 = vadd.f32 %v1463_v8, %v1114_v4 }
 0x2d7   :  { %1141 = vst [vmem:[%s2649_s4 + $0x78] sm:$0xff] %v1123_v13  ;;  %v1149_v6 = vpack.c.bf16 %v1123_v13, %v1120_v19 }
 0x2d8   :  { %1139 = vst [vmem:[%s2649_s4 + $0x68] sm:$0xff] %v1115_v25  ;;  %v1148_v33 = vpack.c.bf16 %v1115_v25, %v1112_v59 }
 0x2da   :  { %1572 = vmatprep.mubr.bf16.mxu1 %v1148_v33 }
 0x2db   :  { %1573 = vmatmul.mubr.bf16.gmra.mrb[12].mxu1 %v1149_v6 }
 0x2e2   :  { %v1562_v9 = vpop.f32.mrb[0].mxu1 }
 0x2e3   :  { %1313 = vst [vmem:[%s2650_s5 + $0x10] sm:$0xff] %v1562_v9  ;;  %v1248_v18 = vpop.f32.mrb[1].mxu1 }
 0x2e4   :  { %1311 = vst [vmem:[%s2650_s5] sm:$0xff] %v1248_v18  ;;  %v1563_v10 = vpop.f32.mrb[2].mxu1 }
 0x2e5   :  { %1314 = vst [vmem:[%s2650_s5 + $0x18] sm:$0xff] %v1563_v10  ;;  %v1251_v57 = vpop.f32.mrb[3].mxu1 }
 0x2e6   :  { %1312 = vst [vmem:[%s2650_s5 + $0x8] sm:$0xff] %v1251_v57 }
 0x31f   :  { %v1566_v45 = vpop.f32.mrb[4].mxu1 }
 0x320   :  { %1317 = vst [vmem:[%s2650_s5 + $0x30] sm:$0xff] %v1566_v45  ;;  %v1264_v62 = vpop.f32.mrb[5].mxu1 }
 0x321   :  { %1315 = vst [vmem:[%s2650_s5 + $0x20] sm:$0xff] %v1264_v62  ;;  %v1567_v27 = vpop.f32.mrb[6].mxu1 }
 0x322   :  { %1318 = vst [vmem:[%s2650_s5 + $0x38] sm:$0xff] %v1567_v27  ;;  %v1267_v2 = vpop.f32.mrb[7].mxu1 }
 0x323   :  { %1316 = vst [vmem:[%s2650_s5 + $0x28] sm:$0xff] %v1267_v2 }
 0x382   :  { %v1570_v3 = vpop.f32.mrb[8].mxu1 }
 0x383   :  { %1321 = vst [vmem:[%s2650_s5 + $0x50] sm:$0xff] %v1570_v3  ;;  %v1280_v17 = vpop.f32.mrb[9].mxu1 }
 0x384   :  { %1319 = vst [vmem:[%s2650_s5 + $0x40] sm:$0xff] %v1280_v17  ;;  %v1571_v42 = vpop.f32.mrb[10].mxu1 }
 0x385   :  { %1322 = vst [vmem:[%s2650_s5 + $0x58] sm:$0xff] %v1571_v42  ;;  %v1283_v22 = vpop.f32.mrb[11].mxu1 }
 0x386   :  { %1320 = vst [vmem:[%s2650_s5 + $0x48] sm:$0xff] %v1283_v22 }
 0x3ae   :  { %v1574_v39 = vpop.f32.mrb[12].mxu1 }
 0x3af   :  { %1325 = vst [vmem:[%s2650_s5 + $0x70] sm:$0xff] %v1574_v39  ;;  %v1296_v14 = vpop.f32.mrb[13].mxu1 }
 0x3b0   :  { %1323 = vst [vmem:[%s2650_s5 + $0x60] sm:$0xff] %v1296_v14  ;;  %v1575_v55 = vpop.f32.mrb[14].mxu1 }
 0x3b1   :  { %1326 = vst [vmem:[%s2650_s5 + $0x78] sm:$0xff] %v1575_v55  ;;  %v1299_v0 = vpop.f32.mrb[15].mxu1 }
 0x3b2   :  { %1324 = vst [vmem:[%s2650_s5 + $0x68] sm:$0xff] %v1299_v0 }

// kernel: receiver_forward.3
= control target key start
LH: loop header
LB: loop body
LE: loop exit
PB: predicated region body
PF: predicated region fallthrough
CT: control target
= control target key end

     0   :  { %13 = vsyncpa [#allocation3], 0  ;;  %s1631_s0 = inlined_call_operand.vmem [shape: f32[2,8,128], index: 0, kind: input, shape index: {}]   ;;  %s1632_s1 = inlined_call_operand.vmem [shape: f32[2,128,128], index: 1, kind: input, shape index: {}]   ;;  %s1633_s2 = inlined_call_operand.vmem [shape: f32[2,8,1], index: 2, kind: input, shape index: {}]   ;;  %s1634_s3 = inlined_call_operand.vmem [shape: f32[2,1,128], index: 3, kind: input, shape index: {}]   ;;  %s1635_s4 = inlined_call_operand.vmem [shape: f32[128,128], index: 4, kind: input, shape index: {}]   ;;  %s1636_s5 = inlined_call_operand.vmem [shape: f32[2,8,128], index: 5, kind: output, shape index: {0}]   ;;  %s1637_s6 = inlined_call_operand.hbm [shape: f32[2,1,128], index: 6, kind: output, shape index: {1}]   ;;  %s1638_s7 = inlined_call_operand.hbm [shape: f32[2,1,128], index: 7, kind: output, shape index: {2}]  }
   0x1   :  { %15 = vsyncpa [#allocation3 + $0x1], 0 }
   0x2   :  { %16 = vsyncpa [#allocation5], 0 }
   0x3   :  { %18 = vsyncpa [#allocation5 + $0x1], 0  ;;  %s1324_s24 = smov 0   ;;  %s1326_s25 = smov 0  }
   0x4   :  { %s1328_s26 = smov 0   ;;  %s1330_s27 = smov 0  }
   0x5 LB: > { %s1345_s28 = sadd.s32 4294967295, %s1276_s27   ;;  %s858_s29 = sadd.s32 4294967294, %s1276_s27   ;;  %s1276_s27 = sphi %s1330_s27, %s1644_s27   ;;  %s1272_s26 = sphi %s1328_s26, %s1643_s26   ;;  %s1268_s25 = sphi %s1326_s25, %s1642_s25   ;;  %s1264_s24 = sphi %s1324_s24, %s1641_s24  }
   0x6   : > { %s1349_s30 = sadd.s32 1, %s1276_s27   ;;  %s182_s8 = sadd.s32 1, %s1272_s26 }
   0x7   : > { %s179_s9 = ssub.s32 %s1276_s27, %s1349_s30  ;;  %p192_p0 = scmp.ne.s32.totalorder %s1272_s26, %s1268_s25 }
   0x8   : > { %p180_p1 = scmp.eq.s32.totalorder %s179_s9, 0  ;;  %p193_p2 = scmp.eq.s32.totalorder %s1345_s28, 1 }
   0x9   : > { %p198_p3 = scmp.ne.s32.totalorder %s1268_s25, %s1264_s24  ;;  %p199_p4 = scmp.eq.s32.totalorder %s858_s29, 1 }
   0xa   : > { %s1360_s10 = scalar_select %p180_p1, %s1272_s26, %s182_s8  }
   0xb   : > { %p1362_p5 = por %p193_p2, %p192_p0  ;;  %p1366_p6 = por %p199_p4, %p198_p3 }
   0xc   : > { %p861_p7 = scmp.ge.s32.totalorder %s1276_s27, 1  ;;  %p274_p8 = scmp.lt.s32.totalorder %s1276_s27, 3 }
   0xe   : > { %p275_p9 = pnand %p861_p7, %p274_p8 }
   0xf   : > { %p324_p10 = scmp.lt.s32.totalorder (!%p275_p9), %s1345_s28, 1  ;;  %v428_v0 = vld [vmem:[%s1635_s4] sm:$0xff] (!%p275_p9)  ;;  %v1278_v1 = vmov (!%p275_p9), 0.0   ;;  %vm1279_vm0 = vmmov (!%p275_p9), 0   ;;  %v429_v2 = vld [vmem:[%s1635_s4 + $0x8] sm:$0xff] (!%p275_p9)  ;;  %v1280_v3 = vmov (!%p275_p9), 0  }
  0x10   : > { %278 = sbr.rel (%p275_p9) target bundleno = 581 (0x245), region = 40  ;;  %934 = vmatprep.subr.bf16.mxu0 (!%p275_p9), %v1278_v1  ;;  %950 = vmatprep.mubr.msk.bf16.mxu0 (!%p275_p9), %vm1279_vm0, %v1278_v1  ;;  %v1385_v4 = vpack.c.bf16 (!%p275_p9), %v429_v2, %v428_v0  ;;  %v1281_v5 = vmov (!%p275_p9), 0.0|0.0   ;;  %v430_v6 = vld [vmem:[%s1635_s4 + $0x10] sm:$0xff] (!%p275_p9)  ;;  %v431_v7 = vld [vmem:[%s1635_s4 + $0x18] sm:$0xff] (!%p275_p9)  ;;  %v432_v12 = vld [vmem:[%s1635_s4 + $0x20] sm:$0xff] (!%p275_p9) }
  0x11   : > { %1179 = vset.pattern.permute.xlu0 (!%p275_p9), %v1280_v3  ;;  %1059 = vmatprep.subr.bf16.mxu1 (!%p275_p9), %v1281_v5  ;;  %v1406_v10 = vpack.c.bf16 (!%p275_p9), %v431_v7, %v430_v6  ;;  %v433_v13 = vld [vmem:[%s1635_s4 + $0x28] sm:$0xff] (!%p275_p9)  ;;  %v434_v18 = vld [vmem:[%s1635_s4 + $0x30] sm:$0xff] (!%p275_p9)  ;;  %v435_v19 = vld [vmem:[%s1635_s4 + $0x38] sm:$0xff] (!%p275_p9) }
  0x12   : > { %986 = vmatprep.mubr.msk.f32.mxu1 (!%p275_p9), %vm1279_vm0, %v1278_v1  ;;  %1061 = vmatpush3.bf16.msra.mxu1 (!%p275_p9), %v1385_v4  ;;  %v1426_v16 = vpack.c.bf16 (!%p275_p9), %v433_v13, %v432_v12  ;;  %v1436_v21 = vpack.c.bf16 (!%p275_p9), %v435_v19, %v434_v18  ;;  %v436_v22 = vld [vmem:[%s1635_s4 + $0x40] sm:$0xff] (!%p275_p9)  ;;  %v437_v23 = vld [vmem:[%s1635_s4 + $0x48] sm:$0xff] (!%p275_p9)  ;;  %v438_v27 = vld [vmem:[%s1635_s4 + $0x50] sm:$0xff] (!%p275_p9) }
  0x13   : > { %1062 = vmatprep.subr.bf16.mxu1 (!%p275_p9), %v1281_v5  ;;  %v1449_v26 = vpack.c.bf16 (!%p275_p9), %v437_v23, %v436_v22  ;;  %v439_v28 = vld [vmem:[%s1635_s4 + $0x58] sm:$0xff] (!%p275_p9)  ;;  %v440_v31 = vld [vmem:[%s1635_s4 + $0x60] sm:$0xff] (!%p275_p9)  ;;  %v441_v32 = vld [vmem:[%s1635_s4 + $0x68] sm:$0xff] (!%p275_p9) }
  0x14   : > { %v1459_v30 = vpack.c.bf16 (!%p275_p9), %v439_v28, %v438_v27  ;;  %v1472_v35 = vpack.c.bf16 (!%p275_p9), %v441_v32, %v440_v31  ;;  %v442_v36 = vld [vmem:[%s1635_s4 + $0x70] sm:$0xff] (!%p275_p9)  ;;  %v443_v37 = vld [vmem:[%s1635_s4 + $0x78] sm:$0xff] (!%p275_p9) }
  0x15   : > { %v1482_v39 = vpack.c.bf16 (!%p275_p9), %v443_v37, %v442_v36 }
  0x16   : > { %1064 = vmatpush3.bf16.msra.mxu1 (!%p275_p9), %v1406_v10 }
  0x17   : > { %s1383_s17 = scalar_select %p324_p10, %s1345_s28, 1  ;;  %1065 = vmatprep.subr.bf16.mxu1 %v1281_v5 }
  0x19   : > { %s873_s22 = sshll.u32 %s1383_s17, 7  ;;  %s1409_s9 = sshll.u32 %s1383_s17, 3 }
  0x1a   : > { %s1401_s8 = scalar_lea.vmem %s1632_s1, %s873_s22  ;;  %s336_s20 = scalar_lea.vmem %s1633_s2, %s1409_s9  ;;  %1067 = vmatpush3.bf16.msra.mxu1 %v1426_v16 }
  0x1b   : > { %v346_v8 = vld [vmem:[%s1401_s8] sm:$0xff]  ;;  %v347_v9 = vld [vmem:[%s1401_s8 + $0x8] sm:$0xff]  ;;  %v348_v14 = vld [vmem:[%s1401_s8 + $0x10] sm:$0xff]  ;;  %1068 = vmatprep.subr.bf16.mxu1 %v1281_v5  ;;  %s327_s21 = scalar_lea.vmem %s1631_s0, %s1409_s9  ;;  %s339_s23 = scalar_lea.vmem %s1634_s3, %s1383_s17 }
  0x1c   : > { %v363_v11 = vpack.c.bf16 %v347_v9, %v346_v8  ;;  %v349_v15 = vld [vmem:[%s1401_s8 + $0x18] sm:$0xff]  ;;  %v412_v17 = vld [vmem:[%s336_s20] sm:$0xff]  ;;  %v351_v25 = vld [vmem:[%s1401_s8 + $0x28] sm:$0xff]  ;;  %s343_s14 = scalar_lea.vmem %s1636_s5, %s1409_s9  ;;  %s1547_s17 = sand.u32 1, %s1268_s25  }
  0x1d   : > { %416 = vperm.xlu0 %1179, %v412_v17   ;;  %v364_v20 = vpack.c.bf16 %v349_v15, %v348_v14  ;;  %v350_v24 = vld [vmem:[%s1401_s8 + $0x20] sm:$0xff]  ;;  %v352_v33 = vld [vmem:[%s1401_s8 + $0x30] sm:$0xff]  ;;  %v353_v34 = vld [vmem:[%s1401_s8 + $0x38] sm:$0xff]  ;;  %s869_s9 = sshll.u32 %s1345_s28, 4  ;;  %s317_s15 = scalar_lea.vmem [#allocation2], %s1547_s17 }
  0x1e   : > { %935 = vmatpush3.bf16.xpose.msra.mxu0 %v363_v11  ;;  %1070 = vmatpush3.bf16.msra.mxu1 %v1436_v21  ;;  %v365_v29 = vpack.c.bf16 %v351_v25, %v350_v24  ;;  %v366_v38 = vpack.c.bf16 %v353_v34, %v352_v33  ;;  %v354_v40 = vld [vmem:[%s1401_s8 + $0x40] sm:$0xff]  ;;  %v355_v41 = vld [vmem:[%s1401_s8 + $0x48] sm:$0xff]  ;;  %v356_v43 = vld [vmem:[%s1401_s8 + $0x50] sm:$0xff]  ;;  %s705_s16 = sshll.u32 %s317_s15, 4  ;;  %s1556_s20 = scalar_lea.hbm %s1637_s6, %s869_s9  ;;  %s1558_s16 = int_to_ptr.vmem [resolvable:$true] %s705_s16 }
  0x1f   : > { %936 = vmatprep.subr.bf16.mxu0 %v1278_v1  ;;  %1071 = vmatprep.subr.bf16.mxu1 %v1281_v5  ;;  %v367_v42 = vpack.c.bf16 %v355_v41, %v354_v40  ;;  %v357_v44 = vld [vmem:[%s1401_s8 + $0x58] sm:$0xff]  ;;  %v358_v46 = vld [vmem:[%s1401_s8 + $0x60] sm:$0xff]  ;;  %v359_v47 = vld [vmem:[%s1401_s8 + $0x68] sm:$0xff]  ;;  %s1282_s22 = smov [#allocation2]  }
  0x20   : > { %v368_v45 = vpack.c.bf16 %v357_v44, %v356_v43  ;;  %v369_v48 = vpack.c.bf16 %v359_v47, %v358_v46  ;;  %v360_v49 = vld [vmem:[%s1401_s8 + $0x70] sm:$0xff]  ;;  %v361_v50 = vld [vmem:[%s1401_s8 + $0x78] sm:$0xff]  ;;  %v345_v52 = vld [vmem:[%s327_s21] sm:$0xff]  ;;  %s686_s21 = scalar_lea.sflag [#allocation3], %s1547_s17  ;;  %s1182_s8 = scalar_lea.vmem %s1558_s16, 16 }
  0x21   : > { %v370_v51 = vpack.c.bf16 %v361_v50, %v360_v49  ;;  %v362_v53 = vpack.c.bf16 %v345_v52, %v345_v52  ;;  %v867_v54 = vld [vmem:[%s339_s23] ss:$0 sm:$0xff]  ;;  %p1183_p11 = scmp.ne.s32.totalorder %s1558_s16, %s1182_s8  ;;  %s1186_s23 = sshll.u32 %s1282_s22, 4  ;;  %s1187_s23 = int_to_ptr.vmem [resolvable:$false] %s1186_s23 }
  0x22   : > { %1073 = vmatpush3.bf16.msra.mxu1 %v1449_v26  ;;  %s1188_s29 = scalar_lea.vmem %s1187_s23, 32  ;;  %p1189_p0 = scmp.lt.s32.totalorder %s1558_s16, %s1187_s23 }
  0x23   : > { %1074 = vmatprep.subr.bf16.mxu1 %v1281_v5  ;;  %p1184_p12 = pnand %p1183_p11, %p1362_p5  ;;  %p1190_p1 = scmp.lt.s32.totalorder %s1188_s29, %s1182_s8 }
  0x25   : > { %p1185_p13 = pneg %p1184_p12  ;;  %p1191_p2 = por %p1190_p1, %p1189_p0 }
  0x26   : > { %937 = vmatpush3.bf16.xpose.msra.mxu0 %v364_v20  ;;  %1076 = vmatpush3.bf16.msra.mxu1 %v1459_v30 }
  0x27   : > { %938 = vmatprep.subr.bf16.mxu0 %v1278_v1  ;;  %1077 = vmatprep.subr.bf16.mxu1 %v1281_v5  ;;  %p1192_p3 = pnand %p1191_p2, %p1185_p13 }
  0x2a   : > { %1079 = vmatpush3.bf16.msra.mxu1 %v1472_v35 }
  0x2b   : > { %1080 = vmatprep.subr.bf16.mxu1 %v1281_v5 }
  0x2e   : > { %939 = vmatpush3.bf16.xpose.msra.mxu0 %v365_v29  ;;  %1082 = vmatpush3.bf16.msra.mxu1 %v1482_v39 }
  0x2f   : > { %940 = vmatprep.subr.bf16.mxu0 %v1278_v1  ;;  %1083 = vmatprep.subr.bf16.mxu1 %v1281_v5 }
  0x36   : > { %941 = vmatpush3.bf16.xpose.msra.mxu0 %v366_v38 }
  0x37   : > { %942 = vmatprep.subr.bf16.mxu0 %v1278_v1 }
  0x3e   : > { %943 = vmatpush3.bf16.xpose.msra.mxu0 %v367_v42 }
  0x3f   : > { %944 = vmatprep.subr.bf16.mxu0 %v1278_v1 }
  0x46   : > { %945 = vmatpush3.bf16.xpose.msra.mxu0 %v368_v45 }
  0x47   : > { %946 = vmatprep.subr.bf16.mxu0 %v1278_v1 }
  0x4e   : > { %947 = vmatpush3.bf16.xpose.msra.mxu0 %v369_v48 }
  0x4f   : > { %948 = vmatprep.subr.bf16.mxu0 %v1278_v1 }
  0x56   : > { %949 = vmatpush3.bf16.xpose.msra.mxu0 %v370_v51 }
  0x57   : > { %1107 = vmatprep.subr.bf16.mxu0 %v1281_v5 }
  0x5d   : > { %951 = vmatmul.mubr.bf16.vlgmr.msra.gmra.mrb[0].mxu0 %v362_v53 }
  0x5e   : > { %1109 = vmatpush3.bf16.msra.mxu0 %v1385_v4  ;;  %1056 = vmatprep.mubr.msk.f32.mxu0 %vm1279_vm0, %v1278_v1 }
  0x5f   : > { %1110 = vmatprep.subr.bf16.mxu0 %v1281_v5 }
  0x62   : > { %1112 = vmatpush3.bf16.msra.mxu0 %v1406_v10 }
  0x63   : > { %1113 = vmatprep.subr.bf16.mxu0 %v1281_v5 }
  0x66   : > { %1115 = vmatpush3.bf16.msra.mxu0 %v1426_v16 }
  0x67   : > { %1116 = vmatprep.subr.bf16.mxu0 %v1281_v5 }
  0x6a   : > { %1118 = vmatpush3.bf16.msra.mxu0 %v1436_v21 }
  0x6b   : > { %1119 = vmatprep.subr.bf16.mxu0 %v1281_v5 }
  0x6e   : > { %1121 = vmatpush3.bf16.msra.mxu0 %v1449_v26 }
  0x6f   : > { %1122 = vmatprep.subr.bf16.mxu0 %v1281_v5 }
  0x72   : > { %1124 = vmatpush3.bf16.msra.mxu0 %v1459_v30 }
  0x73   : > { %1125 = vmatprep.subr.bf16.mxu0 %v1281_v5 }
  0x76   : > { %1127 = vmatpush3.bf16.msra.mxu0 %v1472_v35 }
  0x77   : > { %1128 = vmatprep.subr.bf16.mxu0 %v1281_v5 }
  0x7a   : > { %1130 = vmatpush3.bf16.msra.mxu0 %v1482_v39 }
  0x9c   : > { %v417_v55 = vpop.permute.xlu0 %416 }
  0x9d   : > { %v425_v56 = vmul.f32 %v867_v54, %v417_v55 }
  0x9f   : > { %1057 = vmatmul.mubr.f32.vlgmr.msra.gmra.mrb[4].mxu0 %v425_v56 }
 0x130   : > { %v405_v57 = vpop.f32.mrb[0].mxu0 }
 0x131   : > { %v411_v58 = vmul.f32 0.09090909, %v405_v57  ;;  %v952_v59 = vpop.f32.mrb[1].mxu0 }
 0x132   : > { %v408_v60 = vpop.f32.mrb[2].mxu0 }
 0x133   : > { %v426_v61 = vmul.f32 %v425_v56, %v411_v58  ;;  %v953_v62 = vpop.f32.mrb[3].mxu0 }
 0x135   : > { %427 = vst [vmem:[%s343_s14] sm:$0xff] %v426_v61  ;;  %987 = vmatmul.mubr.f32.vlgmr.msra.gmra.mrb[0].mxu1 %v426_v61  ;;  %v514_v63 = vand.u32 2147483647, %v426_v61 }
 0x136   : > { %1085 = vmatpush3.bf16.msra.mxu1 %v1385_v4  ;;  %1021 = vmatprep.mubr.msk.f32.mxu1 %vm1279_vm0, %v1278_v1 }
 0x137   : > { %1086 = vmatprep.subr.bf16.mxu1 %v1281_v5 }
 0x13a   : > { %1088 = vmatpush3.bf16.msra.mxu1 %v1406_v10 }
 0x13b   : > { %1089 = vmatprep.subr.bf16.mxu1 %v1281_v5 }
 0x13e   : > { %1091 = vmatpush3.bf16.msra.mxu1 %v1426_v16 }
 0x13f   : > { %1092 = vmatprep.subr.bf16.mxu1 %v1281_v5 }
 0x142   : > { %1094 = vmatpush3.bf16.msra.mxu1 %v1436_v21 }
 0x143   : > { %1095 = vmatprep.subr.bf16.mxu1 %v1281_v5 }
 0x146   : > { %1097 = vmatpush3.bf16.msra.mxu1 %v1449_v26 }
 0x147   : > { %1098 = vmatprep.subr.bf16.mxu1 %v1281_v5 }
 0x14a   : > { %1100 = vmatpush3.bf16.msra.mxu1 %v1459_v30 }
 0x14b   : > { %1101 = vmatprep.subr.bf16.mxu1 %v1281_v5 }
 0x14e   : > { %1103 = vmatpush3.bf16.msra.mxu1 %v1472_v35 }
 0x14f   : > { %1104 = vmatprep.subr.bf16.mxu1 %v1281_v5 }
 0x152   : > { %1106 = vmatpush3.bf16.msra.mxu1 %v1482_v39 }
 0x155   : > { %1022 = vmatmul.mubr.f32.vlgmr.msra.gmra.mrb[2].mxu1 %v514_v63 }
 0x172   : > { %v651_v0 = vpop.f32.mrb[4].mxu0 }
 0x173   : > { %v1058_v2 = vpop.f32.mrb[5].mxu0  ;;  %vm667_vm1 = vcmp.gt.f32.partialorder %v651_v0, 0.0 }
 0x174   : > { %v868_v3 = vsel %vm667_vm1, 1.0, %v1278_v1 }
 0x175   : > { %v670_v4 = vrot.slane %v868_v3, 4 }
 0x177   : > { %v671_v6 = vadd.f32 %v868_v3, %v670_v4 }
 0x179   : > { %v672_v7 = vrot.slane %v671_v6, 2 }
 0x17b   : > { %v673_v8 = vadd.f32 %v672_v7, %v671_v6 }
 0x17d   : > { %v674_v9 = vrot.slane %v673_v8, 1 }
 0x17f   : > { %v675_v10 = vadd.f32 %v674_v9, %v673_v8 }
 0x181   : > { %1180 = vrcp.f32 %v675_v10 }
 0x18b   : > { %v1181_v16 = vpop.eup %1180 }
 0x208   : > { %v510_v5 = vpop.f32.mrb[0].mxu1 }
 0x209   : > { %v655_v11 = vrot.slane %v510_v5, 4  ;;  %v988_v12 = vpop.f32.mrb[1].mxu1 }
 0x20b   : > { %v656_v13 = vadd.f32 %v655_v11, %v510_v5 }
 0x20d   : > { %v657_v14 = vrot.slane %v656_v13, 2 }
 0x20f   : > { %v658_v1 = vadd.f32 %v657_v14, %v656_v13 }
 0x211   : > { %v659_v15 = vrot.slane %v658_v1, 1 }
 0x213   : > { %v660_v17 = vadd.f32 %v659_v15, %v658_v1 }
 0x215   : > { %v677_v18 = vmul.f32 %v1181_v16, %v660_v17 }
 0x217   : > { %678 = vst [vmem:[%s317_s15] sm:$0x1] %v677_v18 }
 0x218   : > { %1195 = shalt.err (!%p1192_p3)
}
 0x219   : > { %s1196_s13 = scalar_lea.hbm %s1556_s20, 16  ;;  %s1200_s18 = scalar_lea.hbm %s1637_s6, 32 }
 0x21a   : > { %p1197_p4 = scmp.ne.s32.totalorder %s1556_s20, %s1196_s13  ;;  %p1201_p9 = scmp.lt.u32.totalorder %s1556_s20, %s1637_s6 }
 0x21b   : > { %p1202_p10 = scmp.lt.u32.totalorder %s1200_s18, %s1196_s13  ;;  %p1204_p12 = scmp.lt.u32.totalorder %s1196_s13, %s1556_s20 }
 0x21c   : > { %p1198_p7 = pnand %p1197_p4, %p1362_p5 }
 0x21d   : > { %p1203_p11 = por %p1202_p10, %p1201_p9 }
 0x21e   : > { %p1199_p8 = pneg %p1198_p7 }
 0x21f   : > { %p1205_p13 = por %p1204_p12, %p1203_p11 }
 0x221   : > { %p1206_p0 = pnand %p1205_p13, %p1199_p8 }
 0x223   : > { %1209 = shalt.err (!%p1206_p0)
}
 0x224   : > { %1131 = dma.vmem_to_hbm [thread:$0]  (%p1362_p5), %s1558_s16, 16, %s1556_s20, %s686_s21  }
 0x225   : > { %s323_s8 = scalar_lea.vmem [#allocation4], %s1547_s17  ;;  %s1588_s14 = scalar_lea.hbm %s1638_s7, %s869_s9 }
 0x226   : > { %s718_s23 = sshll.u32 %s323_s8, 4  ;;  %s690_s16 = scalar_lea.sflag [#allocation5], %s1547_s17  ;;  %s1590_s23 = int_to_ptr.vmem [resolvable:$true] %s718_s23 }
 0x227   : > { %s1210_s20 = scalar_lea.vmem %s1590_s23, 16  ;;  %s1283_s21 = smov [#allocation4]  }
 0x228   : > { %v581_v19 = vpop.f32.mrb[2].mxu1  ;;  %p1211_p1 = scmp.ne.s32.totalorder %s1590_s23, %s1210_s20  ;;  %s1214_s15 = sshll.u32 %s1283_s21, 4  ;;  %s1215_s15 = int_to_ptr.vmem [resolvable:$false] %s1214_s15 }
 0x229   : > { %v661_v20 = vrot.slane %v581_v19, 4  ;;  %v1023_v21 = vpop.f32.mrb[3].mxu1  ;;  %s1216_s28 = scalar_lea.vmem %s1215_s15, 32  ;;  %p1217_p4 = scmp.lt.s32.totalorder %s1590_s23, %s1215_s15 }
 0x22a   : > { %p1212_p2 = pnand %p1211_p1, %p1362_p5  ;;  %p1218_p7 = scmp.lt.s32.totalorder %s1216_s28, %s1210_s20 }
 0x22b   : > { %v662_v22 = vadd.f32 %v661_v20, %v581_v19 }
 0x22c   : > { %p1213_p3 = pneg %p1212_p2  ;;  %p1219_p8 = por %p1218_p7, %p1217_p4 }
 0x22d   : > { %v663_v23 = vrot.slane %v662_v22, 2 }
 0x22e   : > { %p1220_p9 = pnand %p1219_p8, %p1213_p3 }
 0x22f   : > { %v664_v24 = vadd.f32 %v663_v23, %v662_v22 }
 0x231   : > { %v665_v25 = vrot.slane %v664_v24, 1 }
 0x233   : > { %v666_v26 = vadd.f32 %v665_v25, %v664_v24 }
 0x235   : > { %v679_v27 = vmul.f32 %v1181_v16, %v666_v26 }
 0x237   : > { %680 = vst [vmem:[%s323_s8] sm:$0x1] %v679_v27 }
 0x238   : > { %1223 = shalt.err (!%p1220_p9)
}
 0x239   : > { %s1224_s17 = scalar_lea.hbm %s1588_s14, 16  ;;  %s1228_s19 = scalar_lea.hbm %s1638_s7, 32 }
 0x23a   : > { %p1225_p10 = scmp.ne.s32.totalorder %s1588_s14, %s1224_s17  ;;  %p1229_p13 = scmp.lt.u32.totalorder %s1588_s14, %s1638_s7 }
 0x23b   : > { %p1230_p0 = scmp.lt.u32.totalorder %s1228_s19, %s1224_s17  ;;  %p1232_p2 = scmp.lt.u32.totalorder %s1224_s17, %s1588_s14 }
 0x23c   : > { %p1226_p11 = pnand %p1225_p10, %p1362_p5 }
 0x23d   : > { %p1231_p1 = por %p1230_p0, %p1229_p13 }
 0x23e   : > { %p1227_p12 = pneg %p1226_p11 }
 0x23f   : > { %p1233_p3 = por %p1232_p2, %p1231_p1 }
 0x241   : > { %p1234_p4 = pnand %p1233_p3, %p1227_p12 }
 0x243   : > { %1237 = shalt.err (!%p1234_p4)
}
 0x244   : > { %1132 = dma.vmem_to_hbm [thread:$0]  (%p1362_p5), %s1590_s23, 16, %s1588_s14, %s690_s16  }
 0x245 PF: > { %p1142_p7 = scmp.ge.s32.totalorder %s1276_s27, 2  ;;  %s737_s29 = sand.u32 1, %s1264_s24  }
 0x246   : > { %s738_s13 = scalar_lea.sflag [#allocation3], %s737_s29 }
 0x247   : > { %p1136_p8 = pnand %p1142_p7, %p1366_p6 }
 0x249   : > { %1255 = dma.done.wait (!%p1136_p8), %s738_s13, 16  }
 0x24a   : > { %1257 = vsyncadd (!%p1136_p8), %s738_s13, 4294967280  ;;  %s746_s20 = scalar_lea.sflag [#allocation5], %s737_s29 }
 0x24b   : > { %1259 = dma.done.wait (!%p1136_p8), %s746_s20, 16  }
 0x24c   : > { %1261 = vsyncadd (!%p1136_p8), %s746_s20, 4294967280  ;;  %p21_p5 = scmp.ge.s32.totalorder %s1349_s30, 4   ;;  %s1641_s24 = smov %s1268_s25 }
 0x24d   : > { %s1642_s25 = smov %s1272_s26  ;;  %s1643_s26 = smov %s1360_s10 }
 0x24e   : > { %s1644_s27 = smov %s1349_s30  ;;  %23 = sbr.rel (!%p21_p5) target bundleno = 5 (0x5), region = 113 }
 0x255   :  { %750 = vsyncpa [#allocation3], 1 }
 0x256   :  { %752 = vsyncpa [#allocation3 + $0x1], 1 }
 0x257   :  { %753 = vsyncpa [#allocation5], 1 }
 0x258   :  { %755 = vsyncpa [#allocation5 + $0x1], 1 }

</bundles_post_ra>
